<compile_context>
chip_gen: v7x
topology: tpu7x:2x2x1
jax: 0.10.0
libtpu: 0.0.40
codegen_flags: <defaults>
</compile_context>

<pallas_src>
import numpy as np
import jax
import jax.numpy as jnp
from jax import lax
from jax.experimental import pallas as pl
from jax.experimental.pallas import tpu as pltpu

WIDTH = 16
HEIGHT = 16
CONV_KERNELS = [4, 8]      # conv_kernels argument of MyCNN
DENSE_DIMS = [32]          # dense_dims argument of MyCNN
NUM_CLASSES = 2
KSIZE = 3                  # kernel_size=3, stride=1 (module defaults)
TAPS = tuple((dy, dx) for dy in range(KSIZE) for dx in range(KSIZE))
KPACK = 8 * len(TAPS)      # 72 patch rows: one 8-row (sublane-aligned) block per tap


# ------------------------------ fused kernel --------------------------------

def fused_cnn_kernel(x_ref, w1_ref, b1_ref, w2_ref, b2_ref,
                     wd1_ref, bd1_ref, wd2_ref, bd2_ref,
                     out_ref, pat_ref, h_ref, a_ref, feat_ref):
    """Whole MyCNN forward for one batch.

    x_ref   : (3, PW)   channels x flat pixel (p = b*H*W + h*W + w), lanes >= P zero.
    w1/w2   : (C, 72)   conv weights packed to the 8-row-per-tap patch layout.
    b*      : (C, 1)    biases.
    wd1_ref : (D1, 32)  dense-1 weight, input dim permuted to kernel feature order.
    wd2_ref : (2, D1)   dense-2 weight.
    out_ref : (2, B)    log-softmax logits (class-major; host transposes back).
    scratch : pat (72, PW), h (C2, PW), a (C2, PW), feat (32, B), all VMEM.
    """
    PW = x_ref.shape[1]
    P = PW - 128                       # valid flat-pixel lanes (multiple of 128)
    B = out_ref.shape[1]
    c_in = x_ref.shape[0]
    c1 = w1_ref.shape[0]
    c2 = w2_ref.shape[0]

    # Make every lane a shifted slice might read well-defined (zeros).
    pat_ref[...] = jnp.zeros_like(pat_ref)
    h_ref[...] = jnp.zeros_like(h_ref)
    a_ref[...] = jnp.zeros_like(a_ref)

    def conv_relu_pool(src_ref, cin, cout, w_ref, b_ref, step):
        # 1) in-kernel im2col: tap (dy, dx) <-> lane shift step*(dy*W + dx).
        #    Each tap occupies an 8-row block of the patch matrix, so all
        #    sublane store offsets are multiples of 8 (unused rows stay zero,
        #    matched by zero columns in the packed weights).
        for t, (dy, dx) in enumerate(TAPS):
            s = step * (dy * WIDTH + dx)
            pat_ref[8 * t: 8 * t + cin, 0:P] = src_ref[0:cin, s: s + P]
        # 2) conv as a single lane-dense MXU pass (Cout, 72) @ (72, P) + bias + ReLU.
        y = jnp.dot(w_ref[...], pat_ref[:, 0:P],
                    preferred_element_type=jnp.float32)
        y = jnp.maximum(y + b_ref[...], 0.0)
        h_ref[0:cout, 0:P] = y
        # 3) 2x2 / stride-2 max-pool as lane-shifted maxima; accumulator starts
        #    from the first window element (no -inf broadcast).
        m = h_ref[0:cout, 0:P]
        for (a, b) in ((0, 1), (1, 0), (1, 1)):
            s = step * (a * WIDTH + b)
            m = jnp.maximum(m, h_ref[0:cout, s: s + P])
        a_ref[0:cout, 0:P] = m

    # Stage 1 works on the native 16x16 grid (step 1); its pooled output lives
    # on the same flat grid at even (h, w), so stage 2 just doubles the step.
    conv_relu_pool(x_ref, c_in, c1, w1_ref, b1_ref, step=1)
    conv_relu_pool(a_ref, c1, c2, w2_ref, b2_ref, step=2)

    # Flatten: final 2x2 spatial grid sits at (4*hp, 4*wp) on the flat grid.
    # Kernel feature order is k' = (hp*2 + wp)*C2 + c; dense-1 weight rows were
    # permuted on the host to make this identical to PyTorch's flatten order.
    n_sp = 2
    for b in range(B):
        for hp in range(n_sp):
            for wp in range(n_sp):
                t = hp * n_sp + wp
                q = b * HEIGHT * WIDTH + (4 * hp) * WIDTH + (4 * wp)
                feat_ref[c2 * t: c2 * (t + 1), b: b + 1] = a_ref[0:c2, q: q + 1]

    # dense-1 + ReLU, dense-2, log_softmax over classes (axis 0), all in VMEM.
    z = jnp.dot(wd1_ref[...], feat_ref[...], preferred_element_type=jnp.float32)
    z = jnp.maximum(z + bd1_ref[...], 0.0)                               # (D1, B)
    z = jnp.dot(wd2_ref[...], z, preferred_element_type=jnp.float32) + bd2_ref[...]  # (2, B)
    zmax = jnp.max(z, axis=0, keepdims=True)
    lse = jnp.log(jnp.sum(jnp.exp(z - zmax), axis=0, keepdims=True))
    out_ref[...] = z - zmax - lse


# ----------------------------- host-side glue -------------------------------

def _full_spec(shape):
    nd = len(shape)
    return pl.BlockSpec(shape, lambda i, _nd=nd: (0,) * _nd)


def _pack_conv_weight(w_hwio):
    """(3,3,Cin,Cout) -> (Cout, 72): 8-row block per tap, matching the kernel."""
    kh, kw, cin, cout = w_hwio.shape
    assert cin <= 8
    wm = jnp.zeros((cout, 8 * kh * kw), jnp.float32)
    for t, (dy, dx) in enumerate(TAPS):
        wm = wm.at[:, 8 * t: 8 * t + cin].set(jnp.transpose(w_hwio[dy, dx]))
    return wm


def pallas_forward(x_nchw, params):
    conv_params, dense_params = params
    (w1, b1), (w2, b2) = conv_params
    (wd1, bd1), (wd2, bd2) = dense_params

    assert (HEIGHT, WIDTH) == (16, 16) and len(conv_params) == 2

    B = x_nchw.shape[0]
    P = B * HEIGHT * WIDTH
    PW = P + 128                                    # slack for shifted slices
    c2 = w2.shape[3]
    n_feat = wd1.shape[0]                           # 32 = c2 * 2 * 2
    d1 = wd1.shape[1]

    # Layout-only glue (cheap): NCHW -> (C, B*H*W), zero-padded along lanes.
    x_flat = jnp.transpose(x_nchw, (1, 0, 2, 3)).reshape(3, P)
    x_flat = jnp.pad(x_flat, ((0, 0), (0, PW - P)))

    w1m = _pack_conv_weight(w1)                     # (c1, 72)
    w2m = _pack_conv_weight(w2)                     # (c2, 72)

    # Kernel flatten order k' = t*c2 + c  vs  PyTorch order k = c*(Hp*Wp) + t.
    n_sp = n_feat // c2
    perm = np.array([(k % c2) * n_sp + (k // c2) for k in range(n_feat)],
                    dtype=np.int32)
    wd1k = jnp.transpose(wd1[perm, :])              # (d1, n_feat)
    wd2k = jnp.transpose(wd2)                       # (2, d1)

    args = (x_flat, w1m, b1.reshape(-1, 1), w2m, b2.reshape(-1, 1),
            wd1k, bd1.reshape(-1, 1), wd2k, bd2.reshape(-1, 1))

    out_t = pl.pallas_call(
        fused_cnn_kernel,
        out_shape=jax.ShapeDtypeStruct((NUM_CLASSES, B), jnp.float32),
        grid=(1,),
        in_specs=[_full_spec(a.shape) for a in args],
        out_specs=_full_spec((NUM_CLASSES, B)),
        scratch_shapes=[
            pltpu.VMEM((KPACK, PW), jnp.float32),   # im2col patch matrix
            pltpu.VMEM((c2, PW), jnp.float32),      # conv output (pre-pool)
            pltpu.VMEM((c2, PW), jnp.float32),      # pooled activations
            pltpu.VMEM((n_feat, B), jnp.float32),   # flattened features
        ],
        compiler_params=pltpu.CompilerParams(
            dimension_semantics=("arbitrary",)),
    )(*args)
    return jnp.transpose(out_t)                     # (B, 2)


# --------------------------- params & reference -----------------------------

def init_params(key):
    conv_params = []
    n_in = 3
    for cout in CONV_KERNELS:
        key, k1, k2 = jax.random.split(key, 3)
        bound = 1.0 / np.sqrt(n_in * KSIZE * KSIZE)
        w = jax.random.uniform(k1, (KSIZE, KSIZE, n_in, cout), jnp.float32, -bound, bound)
        b = jax.random.uniform(k2, (cout,), jnp.float32, -bound, bound)
        conv_params.append((w, b))
        n_in = cout
    wd, hd = WIDTH, HEIGHT
    for _ in CONV_KERNELS:
        wd, hd = (wd - 2) // 2, (hd - 2) // 2
    n_in = wd * hd * CONV_KERNELS[-1]
    dense_params = []
    for dim in DENSE_DIMS + [NUM_CLASSES]:
        key, k1, k2 = jax.random.split(key, 3)
        bound = 1.0 / np.sqrt(n_in)
        w = jax.random.uniform(k1, (n_in, dim), jnp.float32, -bound, bound)
        b = jax.random.uniform(k2, (dim,), jnp.float32, -bound, bound)
        dense_params.append((w, b))
        n_in = dim
    return conv_params, dense_params


def ref_forward(x_nchw, params):
    """Pure-JAX reference matching the PyTorch forward (for validation)."""
    conv_params, dense_params = params
    x = x_nchw
    for w_hwio, b in conv_params:
        w_oihw = jnp.transpose(w_hwio, (3, 2, 0, 1))
        x = lax.conv_general_dilated(x, w_oihw, (1, 1), 'VALID',
                                     dimension_numbers=('NCHW', 'OIHW', 'NCHW'))
        x = jnp.maximum(x + b.reshape(1, -1, 1, 1), 0.0)
        x = lax.reduce_window(x, -jnp.inf, lax.max, (1, 1, 2, 2), (1, 1, 2, 2), 'VALID')
    x = x.reshape(x.shape[0], -1)
    for w, b in dense_params[:-1]:
        x = jnp.maximum(x @ w + b, 0.0)
    w, b = dense_params[-1]
    return jax.nn.log_softmax(x @ w + b, axis=1)


if __name__ == "__main__":
    key = jax.random.PRNGKey(0)
    pkey, xkey = jax.random.split(key)
    params = init_params(pkey)
    x = jax.random.normal(xkey, (2, 3, HEIGHT, WIDTH), jnp.float32)  # NCHW

    out = jax.block_until_ready(pallas_forward(x, params))
    ref = jax.block_until_ready(ref_forward(x, params))

    assert out.shape == (2, NUM_CLASSES)
    np.testing.assert_allclose(np.asarray(out), np.asarray(ref), rtol=1e-4, atol=1e-4)
    # log_softmax rows must exponentiate to probability distributions
    np.testing.assert_allclose(np.exp(np.asarray(out)).sum(axis=1), 1.0, rtol=1e-5, atol=1e-5)
    print("KERNEL_OK")
</pallas_src>

<mosaic_0001>
module attributes {stable_mosaic.version = 11 : i64} {
  func.func @fused_cnn_kernel(%arg0: i32, %arg1: memref<3x640xf32, #tpu.memory_space<vmem>>, %arg2: memref<4x72xf32, #tpu.memory_space<vmem>>, %arg3: memref<4x1xf32, #tpu.memory_space<vmem>>, %arg4: memref<8x72xf32, #tpu.memory_space<vmem>>, %arg5: memref<8x1xf32, #tpu.memory_space<vmem>>, %arg6: memref<32x32xf32, #tpu.memory_space<vmem>>, %arg7: memref<32x1xf32, #tpu.memory_space<vmem>>, %arg8: memref<2x32xf32, #tpu.memory_space<vmem>>, %arg9: memref<2x1xf32, #tpu.memory_space<vmem>>, %arg10: memref<2x2xf32, #tpu.memory_space<vmem>>, %arg11: memref<72x640xf32, #tpu.memory_space<vmem>>, %arg12: memref<8x640xf32, #tpu.memory_space<vmem>>, %arg13: memref<8x640xf32, #tpu.memory_space<vmem>>, %arg14: memref<32x2xf32, #tpu.memory_space<vmem>>) attributes {dimension_semantics = [#tpu.dimension_semantics<arbitrary>], iteration_bounds = array<i64: 1>, scalar_prefetch = 0 : i64, scratch_operands = 4 : i64, tpu.core_type = #tpu.core_type<tc>, window_params = [{pipeline_mode = #tpu.pipeline_mode<synchronous>, transform_indices = @transform_0, window_bounds = array<i64: 3, 640>}, {pipeline_mode = #tpu.pipeline_mode<synchronous>, transform_indices = @transform_1, window_bounds = array<i64: 4, 72>}, {pipeline_mode = #tpu.pipeline_mode<synchronous>, transform_indices = @transform_2, window_bounds = array<i64: 4, 1>}, {pipeline_mode = #tpu.pipeline_mode<synchronous>, transform_indices = @transform_3, window_bounds = array<i64: 8, 72>}, {pipeline_mode = #tpu.pipeline_mode<synchronous>, transform_indices = @transform_4, window_bounds = array<i64: 8, 1>}, {pipeline_mode = #tpu.pipeline_mode<synchronous>, transform_indices = @transform_5, window_bounds = array<i64: 32, 32>}, {pipeline_mode = #tpu.pipeline_mode<synchronous>, transform_indices = @transform_6, window_bounds = array<i64: 32, 1>}, {pipeline_mode = #tpu.pipeline_mode<synchronous>, transform_indices = @transform_7, window_bounds = array<i64: 2, 32>}, {pipeline_mode = #tpu.pipeline_mode<synchronous>, transform_indices = @transform_8, window_bounds = array<i64: 2, 1>}, {pipeline_mode = #tpu.pipeline_mode<synchronous>, transform_indices = @transform_9, window_bounds = array<i64: 2, 2>}]} {
    %cst = arith.constant 0.000000e+00 : f32
    %0 = vector.broadcast %cst : f32 to vector<72x640xf32>
    %c0 = arith.constant 0 : index
    %c0_0 = arith.constant 0 : index
    %1 = vector.load %arg11[%c0, %c0_0] : memref<72x640xf32, #tpu.memory_space<vmem>>, vector<72x640xf32>
    tpu.vector_store %arg11[%c0, %c0_0], %0 {strides = array<i32>} : memref<72x640xf32, #tpu.memory_space<vmem>>, vector<72x640xf32>,
    %cst_1 = arith.constant 0.000000e+00 : f32
    %2 = vector.broadcast %cst_1 : f32 to vector<8x640xf32>
    %c0_2 = arith.constant 0 : index
    %c0_3 = arith.constant 0 : index
    %3 = vector.load %arg12[%c0_2, %c0_3] : memref<8x640xf32, #tpu.memory_space<vmem>>, vector<8x640xf32>
    tpu.vector_store %arg12[%c0_2, %c0_3], %2 {strides = array<i32>} : memref<8x640xf32, #tpu.memory_space<vmem>>, vector<8x640xf32>,
    %cst_4 = arith.constant 0.000000e+00 : f32
    %4 = vector.broadcast %cst_4 : f32 to vector<8x640xf32>
    %c0_5 = arith.constant 0 : index
    %c0_6 = arith.constant 0 : index
    %5 = vector.load %arg13[%c0_5, %c0_6] : memref<8x640xf32, #tpu.memory_space<vmem>>, vector<8x640xf32>
    tpu.vector_store %arg13[%c0_5, %c0_6], %4 {strides = array<i32>} : memref<8x640xf32, #tpu.memory_space<vmem>>, vector<8x640xf32>,
    %c0_7 = arith.constant 0 : index
    %c0_8 = arith.constant 0 : index
    %6 = vector.load %arg1[%c0_7, %c0_8] : memref<3x640xf32, #tpu.memory_space<vmem>>, vector<3x512xf32>
    %c0_9 = arith.constant 0 : index
    %c0_10 = arith.constant 0 : index
    %7 = vector.load %arg11[%c0_9, %c0_10] : memref<72x640xf32, #tpu.memory_space<vmem>>, vector<3x512xf32>
    tpu.vector_store %arg11[%c0_9, %c0_10], %6 {strides = array<i32>} : memref<72x640xf32, #tpu.memory_space<vmem>>, vector<3x512xf32>,
    %c0_11 = arith.constant 0 : index
    %c1 = arith.constant 1 : index
    %8 = vector.load %arg1[%c0_11, %c1] : memref<3x640xf32, #tpu.memory_space<vmem>>, vector<3x512xf32>
    %c8 = arith.constant 8 : index
    %c0_12 = arith.constant 0 : index
    %9 = vector.load %arg11[%c8, %c0_12] : memref<72x640xf32, #tpu.memory_space<vmem>>, vector<3x512xf32>
    tpu.vector_store %arg11[%c8, %c0_12], %8 {strides = array<i32>} : memref<72x640xf32, #tpu.memory_space<vmem>>, vector<3x512xf32>,
    %c0_13 = arith.constant 0 : index
    %c2 = arith.constant 2 : index
    %10 = vector.load %arg1[%c0_13, %c2] : memref<3x640xf32, #tpu.memory_space<vmem>>, vector<3x512xf32>
    %c16 = arith.constant 16 : index
    %c0_14 = arith.constant 0 : index
    %11 = vector.load %arg11[%c16, %c0_14] : memref<72x640xf32, #tpu.memory_space<vmem>>, vector<3x512xf32>
    tpu.vector_store %arg11[%c16, %c0_14], %10 {strides = array<i32>} : memref<72x640xf32, #tpu.memory_space<vmem>>, vector<3x512xf32>,
    %c0_15 = arith.constant 0 : index
    %c16_16 = arith.constant 16 : index
    %12 = vector.load %arg1[%c0_15, %c16_16] : memref<3x640xf32, #tpu.memory_space<vmem>>, vector<3x512xf32>
    %c24 = arith.constant 24 : index
    %c0_17 = arith.constant 0 : index
    %13 = vector.load %arg11[%c24, %c0_17] : memref<72x640xf32, #tpu.memory_space<vmem>>, vector<3x512xf32>
    tpu.vector_store %arg11[%c24, %c0_17], %12 {strides = array<i32>} : memref<72x640xf32, #tpu.memory_space<vmem>>, vector<3x512xf32>,
    %c0_18 = arith.constant 0 : index
    %c17 = arith.constant 17 : index
    %14 = vector.load %arg1[%c0_18, %c17] : memref<3x640xf32, #tpu.memory_space<vmem>>, vector<3x512xf32>
    %c32 = arith.constant 32 : index
    %c0_19 = arith.constant 0 : index
    %15 = vector.load %arg11[%c32, %c0_19] : memref<72x640xf32, #tpu.memory_space<vmem>>, vector<3x512xf32>
    tpu.vector_store %arg11[%c32, %c0_19], %14 {strides = array<i32>} : memref<72x640xf32, #tpu.memory_space<vmem>>, vector<3x512xf32>,
    %c0_20 = arith.constant 0 : index
    %c18 = arith.constant 18 : index
    %16 = vector.load %arg1[%c0_20, %c18] : memref<3x640xf32, #tpu.memory_space<vmem>>, vector<3x512xf32>
    %c40 = arith.constant 40 : index
    %c0_21 = arith.constant 0 : index
    %17 = vector.load %arg11[%c40, %c0_21] : memref<72x640xf32, #tpu.memory_space<vmem>>, vector<3x512xf32>
    tpu.vector_store %arg11[%c40, %c0_21], %16 {strides = array<i32>} : memref<72x640xf32, #tpu.memory_space<vmem>>, vector<3x512xf32>,
    %c0_22 = arith.constant 0 : index
    %c32_23 = arith.constant 32 : index
    %18 = vector.load %arg1[%c0_22, %c32_23] : memref<3x640xf32, #tpu.memory_space<vmem>>, vector<3x512xf32>
    %c48 = arith.constant 48 : index
    %c0_24 = arith.constant 0 : index
    %19 = vector.load %arg11[%c48, %c0_24] : memref<72x640xf32, #tpu.memory_space<vmem>>, vector<3x512xf32>
    tpu.vector_store %arg11[%c48, %c0_24], %18 {strides = array<i32>} : memref<72x640xf32, #tpu.memory_space<vmem>>, vector<3x512xf32>,
    %c0_25 = arith.constant 0 : index
    %c33 = arith.constant 33 : index
    %20 = vector.load %arg1[%c0_25, %c33] : memref<3x640xf32, #tpu.memory_space<vmem>>, vector<3x512xf32>
    %c56 = arith.constant 56 : index
    %c0_26 = arith.constant 0 : index
    %21 = vector.load %arg11[%c56, %c0_26] : memref<72x640xf32, #tpu.memory_space<vmem>>, vector<3x512xf32>
    tpu.vector_store %arg11[%c56, %c0_26], %20 {strides = array<i32>} : memref<72x640xf32, #tpu.memory_space<vmem>>, vector<3x512xf32>,
    %c0_27 = arith.constant 0 : index
    %c34 = arith.constant 34 : index
    %22 = vector.load %arg1[%c0_27, %c34] : memref<3x640xf32, #tpu.memory_space<vmem>>, vector<3x512xf32>
    %c64 = arith.constant 64 : index
    %c0_28 = arith.constant 0 : index
    %23 = vector.load %arg11[%c64, %c0_28] : memref<72x640xf32, #tpu.memory_space<vmem>>, vector<3x512xf32>
    tpu.vector_store %arg11[%c64, %c0_28], %22 {strides = array<i32>} : memref<72x640xf32, #tpu.memory_space<vmem>>, vector<3x512xf32>,
    %c0_29 = arith.constant 0 : index
    %c0_30 = arith.constant 0 : index
    %24 = vector.load %arg2[%c0_29, %c0_30] : memref<4x72xf32, #tpu.memory_space<vmem>>, vector<4x72xf32>
    %c0_31 = arith.constant 0 : index
    %c0_32 = arith.constant 0 : index
    %25 = vector.load %arg11[%c0_31, %c0_32] : memref<72x640xf32, #tpu.memory_space<vmem>>, vector<72x512xf32>
    %cst_33 = arith.constant dense<0.000000e+00> : vector<4x512xf32>
    %26 = tpu.matmul %24, %25, %cst_33 {dimension_numbers = #tpu.dot_dimension_numbers<[1], [0], [0], [1], [0, 0, 1, 1], [], []>} : vector<4x72xf32>, vector<72x512xf32>, vector<4x512xf32> -> vector<4x512xf32>
    %c0_34 = arith.constant 0 : index
    %c0_35 = arith.constant 0 : index
    %27 = vector.load %arg3[%c0_34, %c0_35] : memref<4x1xf32, #tpu.memory_space<vmem>>, vector<4x1xf32>
    %28 = vector.broadcast %27 : vector<4x1xf32> to vector<4x512xf32>
    %29 = arith.addf %26, %28 : vector<4x512xf32>
    %cst_36 = arith.constant 0.000000e+00 : f32
    %30 = vector.broadcast %cst_36 : f32 to vector<4x512xf32>
    %31 = arith.maximumf %29, %30 : vector<4x512xf32>
    %c0_37 = arith.constant 0 : index
    %c0_38 = arith.constant 0 : index
    %32 = vector.load %arg12[%c0_37, %c0_38] : memref<8x640xf32, #tpu.memory_space<vmem>>, vector<4x512xf32>
    tpu.vector_store %arg12[%c0_37, %c0_38], %31 {strides = array<i32>} : memref<8x640xf32, #tpu.memory_space<vmem>>, vector<4x512xf32>,
    %c0_39 = arith.constant 0 : index
    %c0_40 = arith.constant 0 : index
    %33 = vector.load %arg12[%c0_39, %c0_40] : memref<8x640xf32, #tpu.memory_space<vmem>>, vector<4x512xf32>
    %c0_41 = arith.constant 0 : index
    %c1_42 = arith.constant 1 : index
    %34 = vector.load %arg12[%c0_41, %c1_42] : memref<8x640xf32, #tpu.memory_space<vmem>>, vector<4x512xf32>
    %35 = arith.maximumf %33, %34 : vector<4x512xf32>
    %c0_43 = arith.constant 0 : index
    %c16_44 = arith.constant 16 : index
    %36 = vector.load %arg12[%c0_43, %c16_44] : memref<8x640xf32, #tpu.memory_space<vmem>>, vector<4x512xf32>
    %37 = arith.maximumf %35, %36 : vector<4x512xf32>
    %c0_45 = arith.constant 0 : index
    %c17_46 = arith.constant 17 : index
    %38 = vector.load %arg12[%c0_45, %c17_46] : memref<8x640xf32, #tpu.memory_space<vmem>>, vector<4x512xf32>
    %39 = arith.maximumf %37, %38 : vector<4x512xf32>
    %c0_47 = arith.constant 0 : index
    %c0_48 = arith.constant 0 : index
    %40 = vector.load %arg13[%c0_47, %c0_48] : memref<8x640xf32, #tpu.memory_space<vmem>>, vector<4x512xf32>
    tpu.vector_store %arg13[%c0_47, %c0_48], %39 {strides = array<i32>} : memref<8x640xf32, #tpu.memory_space<vmem>>, vector<4x512xf32>,
    %c0_49 = arith.constant 0 : index
    %c0_50 = arith.constant 0 : index
    %41 = vector.load %arg13[%c0_49, %c0_50] : memref<8x640xf32, #tpu.memory_space<vmem>>, vector<4x512xf32>
    %c0_51 = arith.constant 0 : index
    %c0_52 = arith.constant 0 : index
    %42 = vector.load %arg11[%c0_51, %c0_52] : memref<72x640xf32, #tpu.memory_space<vmem>>, vector<4x512xf32>
    tpu.vector_store %arg11[%c0_51, %c0_52], %41 {strides = array<i32>} : memref<72x640xf32, #tpu.memory_space<vmem>>, vector<4x512xf32>,
    %c0_53 = arith.constant 0 : index
    %c2_54 = arith.constant 2 : index
    %43 = vector.load %arg13[%c0_53, %c2_54] : memref<8x640xf32, #tpu.memory_space<vmem>>, vector<4x512xf32>
    %c8_55 = arith.constant 8 : index
    %c0_56 = arith.constant 0 : index
    %44 = vector.load %arg11[%c8_55, %c0_56] : memref<72x640xf32, #tpu.memory_space<vmem>>, vector<4x512xf32>
    tpu.vector_store %arg11[%c8_55, %c0_56], %43 {strides = array<i32>} : memref<72x640xf32, #tpu.memory_space<vmem>>, vector<4x512xf32>,
    %c0_57 = arith.constant 0 : index
    %c4 = arith.constant 4 : index
    %45 = vector.load %arg13[%c0_57, %c4] : memref<8x640xf32, #tpu.memory_space<vmem>>, vector<4x512xf32>
    %c16_58 = arith.constant 16 : index
    %c0_59 = arith.constant 0 : index
    %46 = vector.load %arg11[%c16_58, %c0_59] : memref<72x640xf32, #tpu.memory_space<vmem>>, vector<4x512xf32>
    tpu.vector_store %arg11[%c16_58, %c0_59], %45 {strides = array<i32>} : memref<72x640xf32, #tpu.memory_space<vmem>>, vector<4x512xf32>,
    %c0_60 = arith.constant 0 : index
    %c32_61 = arith.constant 32 : index
    %47 = vector.load %arg13[%c0_60, %c32_61] : memref<8x640xf32, #tpu.memory_space<vmem>>, vector<4x512xf32>
    %c24_62 = arith.constant 24 : index
    %c0_63 = arith.constant 0 : index
    %48 = vector.load %arg11[%c24_62, %c0_63] : memref<72x640xf32, #tpu.memory_space<vmem>>, vector<4x512xf32>
    tpu.vector_store %arg11[%c24_62, %c0_63], %47 {strides = array<i32>} : memref<72x640xf32, #tpu.memory_space<vmem>>, vector<4x512xf32>,
    %c0_64 = arith.constant 0 : index
    %c34_65 = arith.constant 34 : index
    %49 = vector.load %arg13[%c0_64, %c34_65] : memref<8x640xf32, #tpu.memory_space<vmem>>, vector<4x512xf32>
    %c32_66 = arith.constant 32 : index
    %c0_67 = arith.constant 0 : index
    %50 = vector.load %arg11[%c32_66, %c0_67] : memref<72x640xf32, #tpu.memory_space<vmem>>, vector<4x512xf32>
    tpu.vector_store %arg11[%c32_66, %c0_67], %49 {strides = array<i32>} : memref<72x640xf32, #tpu.memory_space<vmem>>, vector<4x512xf32>,
    %c0_68 = arith.constant 0 : index
    %c36 = arith.constant 36 : index
    %51 = vector.load %arg13[%c0_68, %c36] : memref<8x640xf32, #tpu.memory_space<vmem>>, vector<4x512xf32>
    %c40_69 = arith.constant 40 : index
    %c0_70 = arith.constant 0 : index
    %52 = vector.load %arg11[%c40_69, %c0_70] : memref<72x640xf32, #tpu.memory_space<vmem>>, vector<4x512xf32>
    tpu.vector_store %arg11[%c40_69, %c0_70], %51 {strides = array<i32>} : memref<72x640xf32, #tpu.memory_space<vmem>>, vector<4x512xf32>,
    %c0_71 = arith.constant 0 : index
    %c64_72 = arith.constant 64 : index
    %53 = vector.load %arg13[%c0_71, %c64_72] : memref<8x640xf32, #tpu.memory_space<vmem>>, vector<4x512xf32>
    %c48_73 = arith.constant 48 : index
    %c0_74 = arith.constant 0 : index
    %54 = vector.load %arg11[%c48_73, %c0_74] : memref<72x640xf32, #tpu.memory_space<vmem>>, vector<4x512xf32>
    tpu.vector_store %arg11[%c48_73, %c0_74], %53 {strides = array<i32>} : memref<72x640xf32, #tpu.memory_space<vmem>>, vector<4x512xf32>,
    %c0_75 = arith.constant 0 : index
    %c66 = arith.constant 66 : index
    %55 = vector.load %arg13[%c0_75, %c66] : memref<8x640xf32, #tpu.memory_space<vmem>>, vector<4x512xf32>
    %c56_76 = arith.constant 56 : index
    %c0_77 = arith.constant 0 : index
    %56 = vector.load %arg11[%c56_76, %c0_77] : memref<72x640xf32, #tpu.memory_space<vmem>>, vector<4x512xf32>
    tpu.vector_store %arg11[%c56_76, %c0_77], %55 {strides = array<i32>} : memref<72x640xf32, #tpu.memory_space<vmem>>, vector<4x512xf32>,
    %c0_78 = arith.constant 0 : index
    %c68 = arith.constant 68 : index
    %57 = vector.load %arg13[%c0_78, %c68] : memref<8x640xf32, #tpu.memory_space<vmem>>, vector<4x512xf32>
    %c64_79 = arith.constant 64 : index
    %c0_80 = arith.constant 0 : index
    %58 = vector.load %arg11[%c64_79, %c0_80] : memref<72x640xf32, #tpu.memory_space<vmem>>, vector<4x512xf32>
    tpu.vector_store %arg11[%c64_79, %c0_80], %57 {strides = array<i32>} : memref<72x640xf32, #tpu.memory_space<vmem>>, vector<4x512xf32>,
    %c0_81 = arith.constant 0 : index
    %c0_82 = arith.constant 0 : index
    %59 = vector.load %arg4[%c0_81, %c0_82] : memref<8x72xf32, #tpu.memory_space<vmem>>, vector<8x72xf32>
    %c0_83 = arith.constant 0 : index
    %c0_84 = arith.constant 0 : index
    %60 = vector.load %arg11[%c0_83, %c0_84] : memref<72x640xf32, #tpu.memory_space<vmem>>, vector<72x512xf32>
    %cst_85 = arith.constant dense<0.000000e+00> : vector<8x512xf32>
    %61 = tpu.matmul %59, %60, %cst_85 {dimension_numbers = #tpu.dot_dimension_numbers<[1], [0], [0], [1], [0, 0, 1, 1], [], []>} : vector<8x72xf32>, vector<72x512xf32>, vector<8x512xf32> -> vector<8x512xf32>
    %c0_86 = arith.constant 0 : index
    %c0_87 = arith.constant 0 : index
    %62 = vector.load %arg5[%c0_86, %c0_87] : memref<8x1xf32, #tpu.memory_space<vmem>>, vector<8x1xf32>
    %63 = vector.broadcast %62 : vector<8x1xf32> to vector<8x512xf32>
    %64 = arith.addf %61, %63 : vector<8x512xf32>
    %cst_88 = arith.constant 0.000000e+00 : f32
    %65 = vector.broadcast %cst_88 : f32 to vector<8x512xf32>
    %66 = arith.maximumf %64, %65 : vector<8x512xf32>
    %c0_89 = arith.constant 0 : index
    %c0_90 = arith.constant 0 : index
    %67 = vector.load %arg12[%c0_89, %c0_90] : memref<8x640xf32, #tpu.memory_space<vmem>>, vector<8x512xf32>
    tpu.vector_store %arg12[%c0_89, %c0_90], %66 {strides = array<i32>} : memref<8x640xf32, #tpu.memory_space<vmem>>, vector<8x512xf32>,
    %c0_91 = arith.constant 0 : index
    %c0_92 = arith.constant 0 : index
    %68 = vector.load %arg12[%c0_91, %c0_92] : memref<8x640xf32, #tpu.memory_space<vmem>>, vector<8x512xf32>
    %c0_93 = arith.constant 0 : index
    %c2_94 = arith.constant 2 : index
    %69 = vector.load %arg12[%c0_93, %c2_94] : memref<8x640xf32, #tpu.memory_space<vmem>>, vector<8x512xf32>
    %70 = arith.maximumf %68, %69 : vector<8x512xf32>
    %c0_95 = arith.constant 0 : index
    %c32_96 = arith.constant 32 : index
    %71 = vector.load %arg12[%c0_95, %c32_96] : memref<8x640xf32, #tpu.memory_space<vmem>>, vector<8x512xf32>
    %72 = arith.maximumf %70, %71 : vector<8x512xf32>
    %c0_97 = arith.constant 0 : index
    %c34_98 = arith.constant 34 : index
    %73 = vector.load %arg12[%c0_97, %c34_98] : memref<8x640xf32, #tpu.memory_space<vmem>>, vector<8x512xf32>
    %74 = arith.maximumf %72, %73 : vector<8x512xf32>
    %c0_99 = arith.constant 0 : index
    %c0_100 = arith.constant 0 : index
    %75 = vector.load %arg13[%c0_99, %c0_100] : memref<8x640xf32, #tpu.memory_space<vmem>>, vector<8x512xf32>
    tpu.vector_store %arg13[%c0_99, %c0_100], %74 {strides = array<i32>} : memref<8x640xf32, #tpu.memory_space<vmem>>, vector<8x512xf32>,
    %c0_101 = arith.constant 0 : index
    %c0_102 = arith.constant 0 : index
    %76 = vector.load %arg13[%c0_101, %c0_102] : memref<8x640xf32, #tpu.memory_space<vmem>>, vector<8x1xf32>
    %c0_103 = arith.constant 0 : index
    %c0_104 = arith.constant 0 : index
    %77 = vector.load %arg14[%c0_103, %c0_104] : memref<32x2xf32, #tpu.memory_space<vmem>>, vector<8x1xf32>
    tpu.vector_store %arg14[%c0_103, %c0_104], %76 {strides = array<i32>} : memref<32x2xf32, #tpu.memory_space<vmem>>, vector<8x1xf32>,
    %c0_105 = arith.constant 0 : index
    %c4_106 = arith.constant 4 : index
    %78 = vector.load %arg13[%c0_105, %c4_106] : memref<8x640xf32, #tpu.memory_space<vmem>>, vector<8x1xf32>
    %c8_107 = arith.constant 8 : index
    %c0_108 = arith.constant 0 : index
    %79 = vector.load %arg14[%c8_107, %c0_108] : memref<32x2xf32, #tpu.memory_space<vmem>>, vector<8x1xf32>
    tpu.vector_store %arg14[%c8_107, %c0_108], %78 {strides = array<i32>} : memref<32x2xf32, #tpu.memory_space<vmem>>, vector<8x1xf32>,
    %c0_109 = arith.constant 0 : index
    %c64_110 = arith.constant 64 : index
    %80 = vector.load %arg13[%c0_109, %c64_110] : memref<8x640xf32, #tpu.memory_space<vmem>>, vector<8x1xf32>
    %c16_111 = arith.constant 16 : index
    %c0_112 = arith.constant 0 : index
    %81 = vector.load %arg14[%c16_111, %c0_112] : memref<32x2xf32, #tpu.memory_space<vmem>>, vector<8x1xf32>
    tpu.vector_store %arg14[%c16_111, %c0_112], %80 {strides = array<i32>} : memref<32x2xf32, #tpu.memory_space<vmem>>, vector<8x1xf32>,
    %c0_113 = arith.constant 0 : index
    %c68_114 = arith.constant 68 : index
    %82 = vector.load %arg13[%c0_113, %c68_114] : memref<8x640xf32, #tpu.memory_space<vmem>>, vector<8x1xf32>
    %c24_115 = arith.constant 24 : index
    %c0_116 = arith.constant 0 : index
    %83 = vector.load %arg14[%c24_115, %c0_116] : memref<32x2xf32, #tpu.memory_space<vmem>>, vector<8x1xf32>
    tpu.vector_store %arg14[%c24_115, %c0_116], %82 {strides = array<i32>} : memref<32x2xf32, #tpu.memory_space<vmem>>, vector<8x1xf32>,
    %c0_117 = arith.constant 0 : index
    %c256 = arith.constant 256 : index
    %84 = vector.load %arg13[%c0_117, %c256] : memref<8x640xf32, #tpu.memory_space<vmem>>, vector<8x1xf32>
    %c0_118 = arith.constant 0 : index
    %c1_119 = arith.constant 1 : index
    %85 = vector.load %arg14[%c0_118, %c1_119] : memref<32x2xf32, #tpu.memory_space<vmem>>, vector<8x1xf32>
    tpu.vector_store %arg14[%c0_118, %c1_119], %84 {strides = array<i32>} : memref<32x2xf32, #tpu.memory_space<vmem>>, vector<8x1xf32>,
    %c0_120 = arith.constant 0 : index
    %c260 = arith.constant 260 : index
    %86 = vector.load %arg13[%c0_120, %c260] : memref<8x640xf32, #tpu.memory_space<vmem>>, vector<8x1xf32>
    %c8_121 = arith.constant 8 : index
    %c1_122 = arith.constant 1 : index
    %87 = vector.load %arg14[%c8_121, %c1_122] : memref<32x2xf32, #tpu.memory_space<vmem>>, vector<8x1xf32>
    tpu.vector_store %arg14[%c8_121, %c1_122], %86 {strides = array<i32>} : memref<32x2xf32, #tpu.memory_space<vmem>>, vector<8x1xf32>,
    %c0_123 = arith.constant 0 : index
    %c320 = arith.constant 320 : index
    %88 = vector.load %arg13[%c0_123, %c320] : memref<8x640xf32, #tpu.memory_space<vmem>>, vector<8x1xf32>
    %c16_124 = arith.constant 16 : index
    %c1_125 = arith.constant 1 : index
    %89 = vector.load %arg14[%c16_124, %c1_125] : memref<32x2xf32, #tpu.memory_space<vmem>>, vector<8x1xf32>
    tpu.vector_store %arg14[%c16_124, %c1_125], %88 {strides = array<i32>} : memref<32x2xf32, #tpu.memory_space<vmem>>, vector<8x1xf32>,
    %c0_126 = arith.constant 0 : index
    %c324 = arith.constant 324 : index
    %90 = vector.load %arg13[%c0_126, %c324] : memref<8x640xf32, #tpu.memory_space<vmem>>, vector<8x1xf32>
    %c24_127 = arith.constant 24 : index
    %c1_128 = arith.constant 1 : index
    %91 = vector.load %arg14[%c24_127, %c1_128] : memref<32x2xf32, #tpu.memory_space<vmem>>, vector<8x1xf32>
    tpu.vector_store %arg14[%c24_127, %c1_128], %90 {strides = array<i32>} : memref<32x2xf32, #tpu.memory_space<vmem>>, vector<8x1xf32>,
    %c0_129 = arith.constant 0 : index
    %c0_130 = arith.constant 0 : index
    %92 = vector.load %arg6[%c0_129, %c0_130] : memref<32x32xf32, #tpu.memory_space<vmem>>, vector<32x32xf32>
    %c0_131 = arith.constant 0 : index
    %c0_132 = arith.constant 0 : index
    %93 = vector.load %arg14[%c0_131, %c0_132] : memref<32x2xf32, #tpu.memory_space<vmem>>, vector<32x2xf32>
    %cst_133 = arith.constant dense<0.000000e+00> : vector<32x2xf32>
    %94 = tpu.matmul %92, %93, %cst_133 {dimension_numbers = #tpu.dot_dimension_numbers<[1], [0], [0], [1], [0, 0, 1, 1], [], []>} : vector<32x32xf32>, vector<32x2xf32>, vector<32x2xf32> -> vector<32x2xf32>
    %c0_134 = arith.constant 0 : index
    %c0_135 = arith.constant 0 : index
    %95 = vector.load %arg7[%c0_134, %c0_135] : memref<32x1xf32, #tpu.memory_space<vmem>>, vector<32x1xf32>
    %96 = vector.broadcast %95 : vector<32x1xf32> to vector<32x2xf32>
    %97 = arith.addf %94, %96 : vector<32x2xf32>
    %cst_136 = arith.constant 0.000000e+00 : f32
    %98 = vector.broadcast %cst_136 : f32 to vector<32x2xf32>
    %99 = arith.maximumf %97, %98 : vector<32x2xf32>
    %c0_137 = arith.constant 0 : index
    %c0_138 = arith.constant 0 : index
    %100 = vector.load %arg8[%c0_137, %c0_138] : memref<2x32xf32, #tpu.memory_space<vmem>>, vector<2x32xf32>
    %cst_139 = arith.constant dense<0.000000e+00> : vector<2x2xf32>
    %101 = tpu.matmul %100, %99, %cst_139 {dimension_numbers = #tpu.dot_dimension_numbers<[1], [0], [0], [1], [0, 0, 1, 1], [], []>} : vector<2x32xf32>, vector<32x2xf32>, vector<2x2xf32> -> vector<2x2xf32>
    %c0_140 = arith.constant 0 : index
    %c0_141 = arith.constant 0 : index
    %102 = vector.load %arg9[%c0_140, %c0_141] : memref<2x1xf32, #tpu.memory_space<vmem>>, vector<2x1xf32>
    %103 = vector.broadcast %102 : vector<2x1xf32> to vector<2x2xf32>
    %104 = arith.addf %101, %103 : vector<2x2xf32>
    %cst_142 = arith.constant dense<0xFF800000> : vector<2xf32>
    %105 = vector.multi_reduction <maximumf>, %104, %cst_142 [0] : vector<2x2xf32> to vector<2xf32>
    %106 = vector.shape_cast %105 : vector<2xf32> to vector<1x2xf32>
    %107 = vector.broadcast %106 : vector<1x2xf32> to vector<2x2xf32>
    %108 = arith.subf %104, %107 : vector<2x2xf32>
    %109 = math.exp %108 : vector<2x2xf32>
    %cst_143 = arith.constant dense<0.000000e+00> : vector<2xf32>
    %110 = vector.multi_reduction <add>, %109, %cst_143 [0] : vector<2x2xf32> to vector<2xf32>
    %111 = vector.shape_cast %110 : vector<2xf32> to vector<1x2xf32>
    %112 = math.log %111 : vector<1x2xf32>
    %113 = vector.broadcast %106 : vector<1x2xf32> to vector<2x2xf32>
    %114 = arith.subf %104, %113 : vector<2x2xf32>
    %115 = vector.broadcast %112 : vector<1x2xf32> to vector<2x2xf32>
    %116 = arith.subf %114, %115 : vector<2x2xf32>
    %c0_144 = arith.constant 0 : index
    %c0_145 = arith.constant 0 : index
    %117 = vector.load %arg10[%c0_144, %c0_145] : memref<2x2xf32, #tpu.memory_space<vmem>>, vector<2x2xf32>
    tpu.vector_store %arg10[%c0_144, %c0_145], %116 {strides = array<i32>} : memref<2x2xf32, #tpu.memory_space<vmem>>, vector<2x2xf32>,
    return
  }
  func.func @transform_0(%arg0: i32) -> (i32, i32) {
    %c0_i32 = arith.constant 0 : i32
    %c0_i32_0 = arith.constant 0 : i32
    %c0_i32_1 = arith.constant 0 : i32
    return %c0_i32, %c0_i32_0 : i32, i32
  }
  func.func @transform_1(%arg0: i32) -> (i32, i32) {
    %c0_i32 = arith.constant 0 : i32
    %c0_i32_0 = arith.constant 0 : i32
    %c0_i32_1 = arith.constant 0 : i32
    return %c0_i32, %c0_i32_0 : i32, i32
  }
  func.func @transform_2(%arg0: i32) -> (i32, i32) {
    %c0_i32 = arith.constant 0 : i32
    %c0_i32_0 = arith.constant 0 : i32
    %c0_i32_1 = arith.constant 0 : i32
    return %c0_i32, %c0_i32_0 : i32, i32
  }
  func.func @transform_3(%arg0: i32) -> (i32, i32) {
    %c0_i32 = arith.constant 0 : i32
    %c0_i32_0 = arith.constant 0 : i32
    %c0_i32_1 = arith.constant 0 : i32
    return %c0_i32, %c0_i32_0 : i32, i32
  }
  func.func @transform_4(%arg0: i32) -> (i32, i32) {
    %c0_i32 = arith.constant 0 : i32
    %c0_i32_0 = arith.constant 0 : i32
    %c0_i32_1 = arith.constant 0 : i32
    return %c0_i32, %c0_i32_0 : i32, i32
  }
  func.func @transform_5(%arg0: i32) -> (i32, i32) {
    %c0_i32 = arith.constant 0 : i32
    %c0_i32_0 = arith.constant 0 : i32
    %c0_i32_1 = arith.constant 0 : i32
    return %c0_i32, %c0_i32_0 : i32, i32
  }
  func.func @transform_6(%arg0: i32) -> (i32, i32) {
    %c0_i32 = arith.constant 0 : i32
    %c0_i32_0 = arith.constant 0 : i32
    %c0_i32_1 = arith.constant 0 : i32
    return %c0_i32, %c0_i32_0 : i32, i32
  }
  func.func @transform_7(%arg0: i32) -> (i32, i32) {
    %c0_i32 = arith.constant 0 : i32
    %c0_i32_0 = arith.constant 0 : i32
    %c0_i32_1 = arith.constant 0 : i32
    return %c0_i32, %c0_i32_0 : i32, i32
  }
  func.func @transform_8(%arg0: i32) -> (i32, i32) {
    %c0_i32 = arith.constant 0 : i32
    %c0_i32_0 = arith.constant 0 : i32
    %c0_i32_1 = arith.constant 0 : i32
    return %c0_i32, %c0_i32_0 : i32, i32
  }
  func.func @transform_9(%arg0: i32) -> (i32, i32) {
    %c0_i32 = arith.constant 0 : i32
    %c0_i32_0 = arith.constant 0 : i32
    %c0_i32_1 = arith.constant 0 : i32
    return %c0_i32, %c0_i32_0 : i32, i32
  }
}

</mosaic_0001>

<bundles_post_ra>
// kernel: tpu_custom_call.1
= control target key start
LH: loop header
LB: loop body
LE: loop exit
PB: predicated region body
PF: predicated region fallthrough
CT: control target
= control target key end

     0   :  { %14 = vsyncpa [#allocation7], 0  ;;  %s2211_s0 = inlined_call_operand.vmem [shape: f32[3,640], index: 0, kind: input, shape index: {}]   ;;  %s2212_s1 = inlined_call_operand.hbm [shape: f32[4,72], index: 1, kind: input, shape index: {}]   ;;  %s2213_s2 = inlined_call_operand.vmem [shape: f32[4,1], index: 2, kind: input, shape index: {}]   ;;  %s2214_s3 = inlined_call_operand.vmem [shape: f32[8,72], index: 3, kind: input, shape index: {}]   ;;  %s2215_s4 = inlined_call_operand.vmem [shape: f32[8,1], index: 4, kind: input, shape index: {}]   ;;  %s2216_s5 = inlined_call_operand.vmem [shape: f32[32,32], index: 5, kind: input, shape index: {}]   ;;  %s2217_s6 = inlined_call_operand.vmem [shape: f32[32,1], index: 6, kind: input, shape index: {}]   ;;  %s2218_s7 = inlined_call_operand.vmem [shape: f32[2,32], index: 7, kind: input, shape index: {}]   ;;  %s2219_s8 = inlined_call_operand.vmem [shape: f32[2,1], index: 8, kind: input, shape index: {}]   ;;  %s2220_s9 = inlined_call_operand.hbm [shape: f32[2,2], index: 9, kind: output, shape index: {}]  }
   0x1   :  { %15 = vsyncpa [#allocation8], 0  ;;  %s1708_s30 = smov [#allocation6]   ;;  %s1660_s13 = scalar_lea.hbm %s2212_s1, 64 }
   0x2   :  { %s24_s10 = sshll.u32 %s1708_s30, 4  ;;  %p1661_p0 = scmp.ne.s32.totalorder %s2212_s1, %s1660_s13  ;;  %s25_s10 = int_to_ptr.vmem [resolvable:$true] %s24_s10 }
   0x3   :  { %p1664_p1 = scmp.lt.u32.totalorder %s1660_s13, %s2212_s1 }
   0x5   :  { %p1666_p2 = pnand %p1664_p1, %p1661_p0 }
   0x7   :  { %1669 = shalt.err (!%p1666_p2)
}
   0x8   :  { %s1670_s18 = scalar_lea.vmem %s25_s10, 64  ;;  %p1675_p4 = scmp.lt.s32.totalorder %s25_s10, %s25_s10 }
   0x9   :  { %p1671_p3 = scmp.ne.s32.totalorder %s25_s10, %s1670_s18  ;;  %p1676_p5 = scmp.lt.s32.totalorder %s1670_s18, %s1670_s18 }
   0xb   :  { %p1677_p6 = por %p1676_p5, %p1675_p4 }
   0xd   :  { %p1678_p7 = pnand %p1677_p6, %p1671_p3 }
   0xf   :  { %1681 = shalt.err (!%p1678_p7)
}
  0x10   :  { %27 = dma.hbm_to_vmem [thread:$0]  %s2212_s1, 64, %s25_s10, [#allocation7]  }
  0x11   :  { %1704 = dma.done.wait [#allocation7], 64  }
  0x12   :  { %1705 = vsyncadd [#allocation7], 4294967232  ;;  %v1709_v0 = vmov 0.0   ;;  %v114_v1 = vld [vmem:[%s2211_s0 + $0x10] sm:$0x7]  ;;  %s1710_s24 = smov 127  }
  0x13   :  { %49 = vst [vmem:[#allocation2 + $0x20] sm:$0xff] %v1709_v0  ;;  %45 = vst [vmem:[#allocation2] sm:$0xff] %v1709_v0  ;;  %471 = vmatprep.mubr.f32.mxu0 %v1709_v0  ;;  %542 = vmatprep.mubr.f32.mxu1 %v1709_v0  ;;  %v113_v2 = vld [vmem:[%s2211_s0 + $0x8] sm:$0x77]  ;;  %v112_v4 = vld [vmem:[%s2211_s0] sm:$0x77] }
  0x14   :  { %46 = vst [vmem:[#allocation2 + $0x8] sm:$0xff] %v1709_v0  ;;  %47 = vst [vmem:[#allocation2 + $0x10] sm:$0xff] %v1709_v0  ;;  %128 = vrot.lane.b32.xlu1 %v114_v1, %s1710_s24  ;;  %124 = vrot.lane.b32.xlu0 %v113_v2, %s1710_s24  ;;  %v119_v3 = vcombine.high %v113_v2, %v113_v2  ;;  %v143_v5 = vld [vmem:[%s2211_s0] sm:$0x77]  ;;  %v118_v6 = vcombine.high %v112_v4, %v112_v4  ;;  %v144_v8 = vld [vmem:[%s2211_s0 + $0x8] sm:$0x77] }
  0x15   :  { %48 = vst [vmem:[#allocation2 + $0x18] sm:$0xff] %v1709_v0  ;;  %50 = vst [vmem:[#allocation2 + $0x28] sm:$0xff] %v1709_v0  ;;  %v149_v7 = vcombine.high %v143_v5, %v143_v5  ;;  %v101_v9 = vld [vmem:[%s2211_s0 + $0x8] sm:$0x77]  ;;  %s1711_s12 = smov 126   ;;  %v150_v10 = vcombine.high %v144_v8, %v144_v8  ;;  %s1712_s1 = smov 112  }
  0x16   :  { %51 = vst [vmem:[#allocation2 + $0x30] sm:$0xff] %v1709_v0  ;;  %52 = vst [vmem:[#allocation2 + $0x38] sm:$0xff] %v1709_v0  ;;  %v105_v11 = vcombine.high %v101_v9, %v101_v9  ;;  %v100_v12 = vld [vmem:[%s2211_s0] sm:$0x77]  ;;  %v145_v16 = vld [vmem:[%s2211_s0 + $0x10] sm:$0x7] }
  0x17   :  { %53 = vst [vmem:[#allocation2 + $0x40] sm:$0xff] %v1709_v0  ;;  %55 = vst [vmem:[#allocation2 + $0x50] sm:$0xff] %v1709_v0  ;;  %v174_v13 = vld [vmem:[%s2211_s0] sm:$0x77]  ;;  %v104_v14 = vcombine.high %v100_v12, %v100_v12  ;;  %v175_v17 = vld [vmem:[%s2211_s0 + $0x8] sm:$0x77] }
  0x18   :  { %56 = vst [vmem:[#allocation2 + $0x58] sm:$0xff] %v1709_v0  ;;  %57 = vst [vmem:[#allocation2 + $0x60] sm:$0xff] %v1709_v0  ;;  %126 = vrot.lane.b32.xlu1 %v119_v3, %s1710_s24  ;;  %120 = vrot.lane.b32.xlu0 %v112_v4, %s1710_s24  ;;  %v180_v15 = vcombine.high %v174_v13, %v174_v13  ;;  %v181_v18 = vcombine.high %v175_v17, %v175_v17  ;;  %v176_v19 = vld [vmem:[%s2211_s0 + $0x10] sm:$0x7]  ;;  %v205_v20 = vld [vmem:[%s2211_s0] sm:$0x77] }
  0x19   :  { %58 = vst [vmem:[#allocation2 + $0x68] sm:$0xff] %v1709_v0  ;;  %60 = vst [vmem:[#allocation2 + $0x78] sm:$0xff] %v1709_v0  ;;  %v211_v21 = vcombine.high %v205_v20, %v205_v20  ;;  %v206_v22 = vld [vmem:[%s2211_s0 + $0x8] sm:$0x77]  ;;  %s1713_s28 = smov 111   ;;  %s1714_s15 = smov 110  }
  0x1a   :  { %61 = vst [vmem:[#allocation2 + $0x80] sm:$0xff] %v1709_v0  ;;  %62 = vst [vmem:[#allocation2 + $0x88] sm:$0xff] %v1709_v0  ;;  %v212_v23 = vcombine.high %v206_v22, %v206_v22  ;;  %v236_v24 = vld [vmem:[%s2211_s0] sm:$0x77]  ;;  %v207_v26 = vld [vmem:[%s2211_s0 + $0x10] sm:$0x7] }
  0x1b   :  { %63 = vst [vmem:[#allocation2 + $0x90] sm:$0xff] %v1709_v0  ;;  %65 = vst [vmem:[#allocation2 + $0xa0] sm:$0xff] %v1709_v0  ;;  %v242_v25 = vcombine.high %v236_v24, %v236_v24  ;;  %v237_v27 = vld [vmem:[%s2211_s0 + $0x8] sm:$0x77]  ;;  %v238_v29 = vld [vmem:[%s2211_s0 + $0x10] sm:$0x7] }
  0x1c   :  { %66 = vst [vmem:[#allocation2 + $0xa8] sm:$0xff] %v1709_v0  ;;  %67 = vst [vmem:[#allocation2 + $0xb0] sm:$0xff] %v1709_v0  ;;  %153 = vrot.lane.b32.xlu1 %v149_v7, %s1711_s12  ;;  %122 = vrot.lane.b32.xlu0 %v118_v6, %s1710_s24  ;;  %v243_v28 = vcombine.high %v237_v27, %v237_v27  ;;  %v267_v30 = vld [vmem:[%s2211_s0] sm:$0x77]  ;;  %v268_v32 = vld [vmem:[%s2211_s0 + $0x8] sm:$0x77] }
  0x1d   :  { %68 = vst [vmem:[#allocation2 + $0xb8] sm:$0xff] %v1709_v0  ;;  %70 = vst [vmem:[#allocation2 + $0xc8] sm:$0xff] %v1709_v0  ;;  %v273_v31 = vcombine.high %v267_v30, %v267_v30  ;;  %s1715_s22 = smov 96   ;;  %v274_v33 = vcombine.high %v268_v32, %v268_v32  ;;  %v298_v34 = vld [vmem:[%s2211_s0] sm:$0x77]  ;;  %s1716_s10 = smov 95  }
  0x1e   :  { %71 = vst [vmem:[#allocation2 + $0xd0] sm:$0xff] %v1709_v0  ;;  %72 = vst [vmem:[#allocation2 + $0xd8] sm:$0xff] %v1709_v0  ;;  %v304_v35 = vcombine.high %v298_v34, %v298_v34  ;;  %v269_v36 = vld [vmem:[%s2211_s0 + $0x10] sm:$0x7]  ;;  %v299_v37 = vld [vmem:[%s2211_s0 + $0x8] sm:$0x77] }
  0x1f   :  { %73 = vst [vmem:[#allocation2 + $0xe0] sm:$0xff] %v1709_v0  ;;  %75 = vst [vmem:[#allocation2 + $0xf0] sm:$0xff] %v1709_v0  ;;  %v305_v38 = vcombine.high %v299_v37, %v299_v37  ;;  %v300_v39 = vld [vmem:[%s2211_s0 + $0x10] sm:$0x7]  ;;  %v329_v40 = vld [vmem:[%s2211_s0] sm:$0x77] }
  0x20   :  { %76 = vst [vmem:[#allocation2 + $0xf8] sm:$0xff] %v1709_v0  ;;  %77 = vst [vmem:[#allocation2 + $0x100] sm:$0xff] %v1709_v0  ;;  %157 = vrot.lane.b32.xlu1 %v150_v10, %s1711_s12  ;;  %155 = vrot.lane.b32.xlu0 %v144_v8, %s1711_s12  ;;  %v335_v41 = vcombine.high %v329_v40, %v329_v40  ;;  %v330_v42 = vld [vmem:[%s2211_s0 + $0x8] sm:$0x77]  ;;  %s1717_s18 = smov 94   ;;  %v1718_v45 = vmov 0  }
  0x21   :  { %78 = vst [vmem:[#allocation2 + $0x108] sm:$0xff] %v1709_v0  ;;  %80 = vst [vmem:[#allocation2 + $0x118] sm:$0xff] %v1709_v0  ;;  %v336_v43 = vcombine.high %v330_v42, %v330_v42  ;;  %v331_v44 = vld [vmem:[%s2211_s0 + $0x10] sm:$0x7]  ;;  %1635 = vset.pattern.permute.xlu0 %v1718_v45  ;;  %1636 = vset.pattern.permute.xlu1 %v1718_v45  ;;  %v397_v46 = vld [vmem:[%s2213_s2] sm:$0xf] }
  0x22   :  { %81 = vst [vmem:[#allocation2 + $0x120] sm:$0xff] %v1709_v0  ;;  %82 = vst [vmem:[#allocation2 + $0x128] sm:$0xff] %v1709_v0  ;;  %vm130_vm0 = vcmask 1039360   ;;  %vm161_vm1 = vcmask 1031168   ;;  %vm192_vm2 = vcmask 916480   ;;  %vm223_vm3 = vcmask 908288  }
  0x23   :  { %83 = vst [vmem:[#allocation2 + $0x130] sm:$0xff] %v1709_v0  ;;  %85 = vst [vmem:[#allocation2 + $0x140] sm:$0xff] %v1709_v0  ;;  %vm254_vm4 = vcmask 900096   ;;  %vm285_vm5 = vcmask 785408   ;;  %vm316_vm6 = vcmask 777216   ;;  %vm347_vm7 = vcmask 769024  }
  0x24   :  { %86 = vst [vmem:[#allocation2 + $0x148] sm:$0xff] %v1709_v0  ;;  %87 = vst [vmem:[#allocation2 + $0x150] sm:$0xff] %v1709_v0  ;;  %184 = vrot.lane.b32.xlu1 %v180_v15, %s1712_s1  ;;  %159 = vrot.lane.b32.xlu0 %v145_v16, %s1711_s12  ;;  %vm403_vm8 = vcmask 588800   ;;  %s1719_s0 = smov 124   ;;  %s1720_s2 = smov 64   ;;  %vm701_vm9 = vcmask 1014784  }
  0x25   :  { %88 = vst [vmem:[#allocation2 + $0x158] sm:$0xff] %v1709_v0  ;;  %90 = vst [vmem:[#allocation3] sm:$0xff] %v1709_v0  ;;  %vm798_vm10 = vcmask 752640   ;;  %vm831_vm11 = vcmask 523264   ;;  %vm864_vm12 = vcmask 506880   ;;  %vm897_vm13 = vcmask 490496  }
  0x26   :  { %91 = vst [vmem:[#allocation3 + $0x8] sm:$0xff] %v1709_v0  ;;  %92 = vst [vmem:[#allocation3 + $0x10] sm:$0xff] %v1709_v0  ;;  %vm1191_vm14 = vcmask 7168   ;;  %s1725_s29 = smov 125   ;;  %vm1268_vm15 = vcmask 261120   ;;  %s1726_s11 = smov 65  }
  0x27   :  { %93 = vst [vmem:[#allocation3 + $0x18] sm:$0xff] %v1709_v0  ;;  %94 = vst [vmem:[#allocation3 + $0x20] sm:$0xff] %v1709_v0  ;;  %s1727_s13 = smov 61  }
  0x28   :  { %95 = vst [vmem:[#allocation4] sm:$0xff] %v1709_v0  ;;  %96 = vst [vmem:[#allocation4 + $0x8] sm:$0xff] %v1709_v0  ;;  %188 = vrot.lane.b32.xlu1 %v181_v18, %s1712_s1  ;;  %186 = vrot.lane.b32.xlu0 %v175_v17, %s1712_s1 }
  0x29   :  { %97 = vst [vmem:[#allocation4 + $0x10] sm:$0xff] %v1709_v0  ;;  %98 = vst [vmem:[#allocation4 + $0x18] sm:$0xff] %v1709_v0 }
  0x2a   :  { %99 = vst [vmem:[#allocation4 + $0x20] sm:$0xff] %v1709_v0  ;;  %110 = vst [vmem:[#allocation2 + $0x10] sm:$0x7] %v101_v9 }
  0x2b   :  { %108 = vst [vmem:[#allocation2] sm:$0x7] %v100_v12  ;;  %111 = vst [vmem:[#allocation2 + $0x18] sm:$0x7] %v105_v11 }
  0x2c   :  { %109 = vst [vmem:[#allocation2 + $0x8] sm:$0x7] %v104_v14  ;;  %151 = vrot.lane.b32.xlu1 %v143_v5, %s1711_s12  ;;  %190 = vrot.lane.b32.xlu0 %v176_v19, %s1712_s1 }
  0x30   :  { %215 = vrot.lane.b32.xlu1 %v211_v21, %s1713_s28  ;;  %182 = vrot.lane.b32.xlu0 %v174_v13, %s1712_s1 }
  0x31   :  { %v363_v58 = vld [vmem:[#allocation2 + $0x10] sm:$0xff] }
  0x32   :  { %v364_v57 = vld [vmem:[#allocation2 + $0x18] sm:$0xff]  ;;  %v361_v5 = vld [vmem:[#allocation2] sm:$0xff] }
  0x33   :  { %v362_v4 = vld [vmem:[#allocation2 + $0x8] sm:$0xff] }
  0x34   :  { %219 = vrot.lane.b32.xlu1 %v212_v23, %s1713_s28  ;;  %217 = vrot.lane.b32.xlu0 %v206_v22, %s1713_s28 }
  0x38   :  { %246 = vrot.lane.b32.xlu1 %v242_v25, %s1714_s15  ;;  %221 = vrot.lane.b32.xlu0 %v207_v26, %s1713_s28 }
  0x3c   :  { %250 = vrot.lane.b32.xlu1 %v243_v28, %s1714_s15  ;;  %248 = vrot.lane.b32.xlu0 %v237_v27, %s1714_s15 }
  0x40   :  { %213 = vrot.lane.b32.xlu1 %v205_v20, %s1713_s28  ;;  %252 = vrot.lane.b32.xlu0 %v238_v29, %s1714_s15 }
  0x44   :  { %277 = vrot.lane.b32.xlu1 %v273_v31, %s1715_s22  ;;  %244 = vrot.lane.b32.xlu0 %v236_v24, %s1714_s15 }
  0x48   :  { %281 = vrot.lane.b32.xlu1 %v274_v33, %s1715_s22  ;;  %279 = vrot.lane.b32.xlu0 %v268_v32, %s1715_s22 }
  0x4c   :  { %308 = vrot.lane.b32.xlu1 %v304_v35, %s1716_s10  ;;  %283 = vrot.lane.b32.xlu0 %v269_v36, %s1715_s22 }
  0x50   :  { %312 = vrot.lane.b32.xlu1 %v305_v38, %s1716_s10  ;;  %310 = vrot.lane.b32.xlu0 %v299_v37, %s1716_s10 }
  0x54   :  { %275 = vrot.lane.b32.xlu1 %v267_v30, %s1715_s22  ;;  %314 = vrot.lane.b32.xlu0 %v300_v39, %s1716_s10 }
  0x58   :  { %339 = vrot.lane.b32.xlu1 %v335_v41, %s1717_s18  ;;  %306 = vrot.lane.b32.xlu0 %v298_v34, %s1716_s10 }
  0x5c   :  { %343 = vrot.lane.b32.xlu1 %v336_v43, %s1717_s18  ;;  %341 = vrot.lane.b32.xlu0 %v330_v42, %s1717_s18 }
  0x60   :  { %337 = vrot.lane.b32.xlu1 %v329_v40, %s1717_s18  ;;  %345 = vrot.lane.b32.xlu0 %v331_v44, %s1717_s18 }
  0x64   :  { %400 = vperm.xlu0 %1635, %v397_v46  }
  0x86   :  { %v129_v47 = vpop.permute.xlu1 %128  ;;  %v125_v48 = vpop.permute.xlu0 %124 }
  0x8a   :  { %v127_v49 = vpop.permute.xlu1 %126  ;;  %v121_v50 = vpop.permute.xlu0 %120 }
  0x8b   :  { %v133_v51 = vsel %vm130_vm0, %v125_v48, %v127_v49  ;;  %v134_v52 = vsel %vm130_vm0, %v127_v49, %v129_v47 }
  0x8c   :  { %141 = vst [vmem:[#allocation2 + $0x38] sm:$0x7] %v133_v51  ;;  %142 = vst [vmem:[#allocation2 + $0x40] sm:$0x7] %v134_v52 }
  0x8e   :  { %v154_v53 = vpop.permute.xlu1 %153  ;;  %v123_v54 = vpop.permute.xlu0 %122 }
  0x8f   :  { %v131_v55 = vsel %vm130_vm0, %v121_v50, %v123_v54  ;;  %v132_v56 = vsel %vm130_vm0, %v123_v54, %v125_v48 }
  0x90   :  { %139 = vst [vmem:[#allocation2 + $0x28] sm:$0x7] %v131_v55  ;;  %140 = vst [vmem:[#allocation2 + $0x30] sm:$0x7] %v132_v56 }
  0x92   :  { %v158_v59 = vpop.permute.xlu1 %157  ;;  %v156_v60 = vpop.permute.xlu0 %155 }
  0x93   :  { %v163_v61 = vsel %vm161_vm1, %v154_v53, %v156_v60  ;;  %v164_v62 = vsel %vm161_vm1, %v156_v60, %v158_v59  ;;  %v368_v63 = vld [vmem:[#allocation2 + $0x40] sm:$0xff]  ;;  %v367_v1 = vld [vmem:[#allocation2 + $0x38] sm:$0xff] }
  0x94   :  { %171 = vst [vmem:[#allocation2 + $0x58] sm:$0x7] %v163_v61  ;;  %172 = vst [vmem:[#allocation2 + $0x60] sm:$0x7] %v164_v62  ;;  %v1550_v2 = vpack.c.bf16 %v368_v63, %v364_v57  ;;  %v1552_v3 = vpack.c.bf16 %v367_v1, %v363_v58 }
  0x96   :  { %v185_v6 = vpop.permute.xlu1 %184  ;;  %v160_v7 = vpop.permute.xlu0 %159  ;;  %1551 = vmatprep.subr.bf16.mxu1 %v1550_v2 }
  0x97   :  { %v165_v8 = vsel %vm161_vm1, %v158_v59, %v160_v7  ;;  %1553 = vmatpush1.bf16.msra.mxu1 %v1552_v3  ;;  %v366_v9 = vld [vmem:[#allocation2 + $0x30] sm:$0xff]  ;;  %v365_v10 = vld [vmem:[#allocation2 + $0x28] sm:$0xff] }
  0x98   :  { %173 = vst [vmem:[#allocation2 + $0x68] sm:$0x7] %v165_v8  ;;  %v1534_v11 = vpack.c.bf16 %v366_v9, %v362_v4  ;;  %v1536_v12 = vpack.c.bf16 %v365_v10, %v361_v5 }
  0x9a   :  { %v189_v13 = vpop.permute.xlu1 %188  ;;  %v187_v14 = vpop.permute.xlu0 %186  ;;  %1535 = vmatprep.subr.bf16.mxu0 %v1534_v11 }
  0x9b   :  { %v194_v15 = vsel %vm192_vm2, %v185_v6, %v187_v14  ;;  %v195_v16 = vsel %vm192_vm2, %v187_v14, %v189_v13  ;;  %1537 = vmatpush1.bf16.msra.mxu0 %v1536_v12  ;;  %v370_v24 = vld [vmem:[#allocation2 + $0x58] sm:$0xff]  ;;  %v371_v35 = vld [vmem:[#allocation2 + $0x60] sm:$0xff] }
  0x9c   :  { %202 = vst [vmem:[#allocation2 + $0x80] sm:$0x7] %v194_v15  ;;  %203 = vst [vmem:[#allocation2 + $0x88] sm:$0x7] %v195_v16 }
  0x9e   :  { %v152_v17 = vpop.permute.xlu1 %151  ;;  %v191_v18 = vpop.permute.xlu0 %190 }
  0x9f   :  { %v162_v19 = vsel %vm161_vm1, %v152_v17, %v154_v53  ;;  %v196_v20 = vsel %vm192_vm2, %v189_v13, %v191_v18  ;;  %v372_v32 = vld [vmem:[#allocation2 + $0x68] sm:$0xff] }
  0xa0   :  { %170 = vst [vmem:[#allocation2 + $0x50] sm:$0x7] %v162_v19  ;;  %204 = vst [vmem:[#allocation2 + $0x90] sm:$0x7] %v196_v20 }
  0xa2   :  { %v216_v21 = vpop.permute.xlu1 %215  ;;  %v183_v22 = vpop.permute.xlu0 %182 }
  0xa3   :  { %v193_v23 = vsel %vm192_vm2, %v183_v22, %v185_v6  ;;  %v374_v25 = vld [vmem:[#allocation2 + $0x80] sm:$0xff]  ;;  %v375_v29 = vld [vmem:[#allocation2 + $0x88] sm:$0xff] }
  0xa4   :  { %201 = vst [vmem:[#allocation2 + $0x78] sm:$0x7] %v193_v23  ;;  %v1538_v26 = vpack.c.bf16 %v374_v25, %v370_v24  ;;  %v1556_v36 = vpack.c.bf16 %v375_v29, %v371_v35 }
  0xa6   :  { %v220_v27 = vpop.permute.xlu1 %219  ;;  %v218_v28 = vpop.permute.xlu0 %217  ;;  %1539 = vmatprep.subr.bf16.mxu0 %v1538_v26 }
  0xa7   :  { %v225_v30 = vsel %vm223_vm3, %v216_v21, %v218_v28  ;;  %v226_v31 = vsel %vm223_vm3, %v218_v28, %v220_v27  ;;  %v376_v33 = vld [vmem:[#allocation2 + $0x90] sm:$0xff] }
  0xa8   :  { %233 = vst [vmem:[#allocation2 + $0xa8] sm:$0x7] %v225_v30  ;;  %234 = vst [vmem:[#allocation2 + $0xb0] sm:$0x7] %v226_v31  ;;  %v1554_v34 = vpack.c.bf16 %v376_v33, %v372_v32  ;;  %v369_v40 = vld [vmem:[#allocation2 + $0x50] sm:$0xff] }
  0xaa   :  { %v247_v37 = vpop.permute.xlu1 %246  ;;  %v222_v38 = vpop.permute.xlu0 %221  ;;  %1555 = vmatprep.subr.bf16.mxu1 %v1554_v34 }
  0xab   :  { %v227_v39 = vsel %vm223_vm3, %v220_v27, %v222_v38  ;;  %1557 = vmatpush1.bf16.msra.mxu1 %v1556_v36  ;;  %v373_v41 = vld [vmem:[#allocation2 + $0x78] sm:$0xff] }
  0xac   :  { %235 = vst [vmem:[#allocation2 + $0xb8] sm:$0x7] %v227_v39  ;;  %v1540_v42 = vpack.c.bf16 %v373_v41, %v369_v40 }
  0xae   :  { %v251_v43 = vpop.permute.xlu1 %250  ;;  %v249_v44 = vpop.permute.xlu0 %248  ;;  %1541 = vmatpush1.bf16.msra.mxu0 %v1540_v42  ;;  %v360_v42 = vld [vmem:[#allocation6] sm:$0xf] }
  0xaf   :  { %v256_v45 = vsel %vm254_vm4, %v247_v37, %v249_v44  ;;  %v257_v46 = vsel %vm254_vm4, %v249_v44, %v251_v43  ;;  %v378_v54 = vld [vmem:[#allocation2 + $0xa8] sm:$0xff]  ;;  %v379_v2 = vld [vmem:[#allocation2 + $0xb0] sm:$0xff] }
  0xb0   :  { %264 = vst [vmem:[#allocation2 + $0xd0] sm:$0x7] %v256_v45  ;;  %265 = vst [vmem:[#allocation2 + $0xd8] sm:$0x7] %v257_v46  ;;  %v565_v46 = vld [vmem:[#allocation3 + $0x20] sm:$0xf] }
  0xb1   :  { %601 = vrot.lane.b32.xlu1 %v565_v46, %s1712_s1  ;;  %579 = vrot.lane.b32.xlu0 %v565_v46, %s1710_s24 }
  0xb2   :  { %v214_v47 = vpop.permute.xlu1 %213  ;;  %v253_v48 = vpop.permute.xlu0 %252 }
  0xb3   :  { %v224_v49 = vsel %vm223_vm3, %v214_v47, %v216_v21  ;;  %v258_v50 = vsel %vm254_vm4, %v251_v43, %v253_v48  ;;  %v380_v62 = vld [vmem:[#allocation2 + $0xb8] sm:$0xff] }
  0xb4   :  { %232 = vst [vmem:[#allocation2 + $0xa0] sm:$0x7] %v224_v49  ;;  %266 = vst [vmem:[#allocation2 + $0xe0] sm:$0x7] %v258_v50 }
  0xb6   :  { %v278_v51 = vpop.permute.xlu1 %277  ;;  %v245_v52 = vpop.permute.xlu0 %244 }
  0xb7   :  { %v255_v53 = vsel %vm254_vm4, %v245_v52, %v247_v37  ;;  %v382_v55 = vld [vmem:[#allocation2 + $0xd0] sm:$0xff]  ;;  %v383_v59 = vld [vmem:[#allocation2 + $0xd8] sm:$0xff] }
  0xb8   :  { %263 = vst [vmem:[#allocation2 + $0xc8] sm:$0x7] %v255_v53  ;;  %v1542_v56 = vpack.c.bf16 %v382_v55, %v378_v54  ;;  %v1560_v3 = vpack.c.bf16 %v383_v59, %v379_v2  ;;  %v750_v2 = vld [vmem:[#allocation4 + $0x20] sm:$0xf] }
  0xba   :  { %v282_v57 = vpop.permute.xlu1 %281  ;;  %v280_v58 = vpop.permute.xlu0 %279  ;;  %1543 = vmatprep.subr.bf16.mxu0 %v1542_v56 }
  0xbb   :  { %v287_v60 = vsel %vm285_vm5, %v278_v51, %v280_v58  ;;  %v288_v61 = vsel %vm285_vm5, %v280_v58, %v282_v57  ;;  %v384_v63 = vld [vmem:[#allocation2 + $0xe0] sm:$0xff] }
  0xbc   :  { %295 = vst [vmem:[#allocation2 + $0xf8] sm:$0x7] %v287_v60  ;;  %296 = vst [vmem:[#allocation2 + $0x100] sm:$0x7] %v288_v61  ;;  %v1558_v1 = vpack.c.bf16 %v384_v63, %v380_v62  ;;  %v377_v7 = vld [vmem:[#allocation2 + $0xa0] sm:$0xff] }
  0xbd   :  { %v685_v63 = vld [vmem:[#allocation4 + $0x20] sm:$0xf] }
  0xbe   :  { %v309_v4 = vpop.permute.xlu1 %308  ;;  %v284_v5 = vpop.permute.xlu0 %283  ;;  %1559 = vmatprep.subr.bf16.mxu1 %v1558_v1  ;;  %v653_v1 = vld [vmem:[#allocation4 + $0x20] sm:$0xf] }
  0xbf   :  { %v289_v6 = vsel %vm285_vm5, %v282_v57, %v284_v5  ;;  %1561 = vmatpush1.bf16.msra.mxu1 %v1560_v3  ;;  %v381_v8 = vld [vmem:[#allocation2 + $0xc8] sm:$0xff]  ;;  %v718_v3 = vld [vmem:[#allocation4 + $0x20] sm:$0xf] }
  0xc0   :  { %297 = vst [vmem:[#allocation2 + $0x108] sm:$0x7] %v289_v6  ;;  %v1544_v9 = vpack.c.bf16 %v381_v8, %v377_v7  ;;  %v782_v5 = vld [vmem:[#allocation4 + $0x20] sm:$0xf] }
  0xc1   :  { %v848_v6 = vld [vmem:[#allocation4 + $0x20] sm:$0xf] }
  0xc2   :  { %v313_v10 = vpop.permute.xlu1 %312  ;;  %v311_v11 = vpop.permute.xlu0 %310  ;;  %1545 = vmatpush1.bf16.msra.mxu0 %v1544_v9 }
  0xc3   :  { %v318_v12 = vsel %vm316_vm6, %v309_v4, %v311_v11  ;;  %v319_v13 = vsel %vm316_vm6, %v311_v11, %v313_v10  ;;  %v386_v21 = vld [vmem:[#allocation2 + $0xf8] sm:$0xff]  ;;  %v387_v32 = vld [vmem:[#allocation2 + $0x100] sm:$0xff] }
  0xc4   :  { %326 = vst [vmem:[#allocation2 + $0x120] sm:$0x7] %v318_v12  ;;  %327 = vst [vmem:[#allocation2 + $0x128] sm:$0x7] %v319_v13 }
  0xc6   :  { %v276_v14 = vpop.permute.xlu1 %275  ;;  %v315_v15 = vpop.permute.xlu0 %314 }
  0xc7   :  { %v286_v16 = vsel %vm285_vm5, %v276_v14, %v278_v51  ;;  %v320_v17 = vsel %vm316_vm6, %v313_v10, %v315_v15  ;;  %v388_v29 = vld [vmem:[#allocation2 + $0x108] sm:$0xff] }
  0xc8   :  { %294 = vst [vmem:[#allocation2 + $0xf0] sm:$0x7] %v286_v16  ;;  %328 = vst [vmem:[#allocation2 + $0x130] sm:$0x7] %v320_v17 }
  0xca   :  { %v340_v18 = vpop.permute.xlu1 %339  ;;  %v307_v19 = vpop.permute.xlu0 %306 }
  0xcb   :  { %v317_v20 = vsel %vm316_vm6, %v307_v19, %v309_v4  ;;  %v390_v22 = vld [vmem:[#allocation2 + $0x120] sm:$0xff]  ;;  %v391_v26 = vld [vmem:[#allocation2 + $0x128] sm:$0xff]  ;;  %v815_v4 = vld [vmem:[#allocation4 + $0x20] sm:$0xf] }
  0xcc   :  { %325 = vst [vmem:[#allocation2 + $0x118] sm:$0x7] %v317_v20  ;;  %v1546_v23 = vpack.c.bf16 %v390_v22, %v386_v21  ;;  %v1564_v33 = vpack.c.bf16 %v391_v26, %v387_v32 }
  0xce   :  { %v344_v24 = vpop.permute.xlu1 %343  ;;  %v342_v25 = vpop.permute.xlu0 %341  ;;  %1547 = vmatprep.subr.bf16.mxu0 %v1546_v23 }
  0xcf   :  { %v349_v27 = vsel %vm347_vm7, %v340_v18, %v342_v25  ;;  %v350_v28 = vsel %vm347_vm7, %v342_v25, %v344_v24  ;;  %v392_v30 = vld [vmem:[#allocation2 + $0x130] sm:$0xff] }
  0xd0   :  { %357 = vst [vmem:[#allocation2 + $0x148] sm:$0x7] %v349_v27  ;;  %358 = vst [vmem:[#allocation2 + $0x150] sm:$0x7] %v350_v28  ;;  %v1562_v31 = vpack.c.bf16 %v392_v30, %v388_v29  ;;  %v385_v38 = vld [vmem:[#allocation2 + $0xf0] sm:$0xff] }
  0xd2   :  { %v338_v34 = vpop.permute.xlu1 %337  ;;  %v346_v35 = vpop.permute.xlu0 %345  ;;  %1563 = vmatprep.subr.bf16.mxu1 %v1562_v31 }
  0xd3   :  { %v348_v36 = vsel %vm347_vm7, %v338_v34, %v340_v18  ;;  %v351_v37 = vsel %vm347_vm7, %v344_v24, %v346_v35  ;;  %1565 = vmatpush1.bf16.msra.mxu1 %v1564_v33  ;;  %v389_v39 = vld [vmem:[#allocation2 + $0x118] sm:$0xff] }
  0xd4   :  { %356 = vst [vmem:[#allocation2 + $0x140] sm:$0x7] %v348_v36  ;;  %359 = vst [vmem:[#allocation2 + $0x158] sm:$0x7] %v351_v37  ;;  %v1548_v40 = vpack.c.bf16 %v389_v39, %v385_v38 }
  0xd6   :  { %1549 = vmatpush1.bf16.msra.mxu0 %v1548_v40 }
  0xd7   :  { %v394_v41 = vld [vmem:[#allocation2 + $0x148] sm:$0xff]  ;;  %v395_v45 = vld [vmem:[#allocation2 + $0x150] sm:$0xff] }
  0xd8   :  { %423 = vmatprep.subr.mxu0 %v394_v41 }
  0xdb   :  { %v393_v43 = vld [vmem:[#allocation2 + $0x140] sm:$0xff]  ;;  %v396_v44 = vld [vmem:[#allocation2 + $0x158] sm:$0xff] }
  0xdc   :  { %424 = vmatpush1.msra.mxu0 %v393_v43  ;;  %494 = vmatprep.subr.mxu1 %v396_v44 }
  0xdd   :  { %1487 = vmatmul.mubr.msk.f32.vlgmr.msra.gmra.mrb[0].mxu0 %vm403_vm8, %v360_v42  ;;  %495 = vmatpush1.msra.mxu1 %v395_v45 }
  0xde   :  { %1488 = vmatmul.mubr.msk.f32.vlgmr.msra.gmra.mrb[0].mxu1 %vm403_vm8, %v360_v42  ;;  %1020 = vmatprep.mubr.f32.mxu0 %v1709_v0 }
  0xdf   :  { %1091 = vmatprep.mubr.f32.mxu1 %v1709_v0 }
  0xe3   :  { %v401_v47 = vpop.permute.xlu0 %400 }
 0x123   :  { %v602_v7 = vpop.permute.xlu1 %601  ;;  %v580_v8 = vpop.permute.xlu0 %579 }
 0x1b0   :  { %v473_v48 = vpop.f32.mrb[0].mxu0 }
 0x1b1   :  { %v474_v49 = vadd.f32 %v473_v48, %v401_v47  ;;  %v475_v50 = vpop.f32.mrb[1].mxu0  ;;  %v544_v51 = vpop.f32.mrb[0].mxu1 }
 0x1b2   :  { %v476_v52 = vadd.f32 %v475_v50, %v401_v47  ;;  %v545_v53 = vadd.f32 %v544_v51, %v401_v47  ;;  %v546_v54 = vpop.f32.mrb[1].mxu1 }
 0x1b3   :  { %v549_v55 = vmax.f32 %v474_v49, 0.0  ;;  %v547_v56 = vadd.f32 %v546_v54, %v401_v47 }
 0x1b4   :  { %v550_v57 = vmax.f32 %v476_v52, 0.0  ;;  %v551_v58 = vmax.f32 %v545_v53, 0.0 }
 0x1b5   :  { %553 = vst [vmem:[#allocation3] sm:$0xf] %v549_v55  ;;  %v552_v59 = vmax.f32 %v547_v56, 0.0 }
 0x1b6   :  { %554 = vst [vmem:[#allocation3 + $0x8] sm:$0xf] %v550_v57  ;;  %555 = vst [vmem:[#allocation3 + $0x10] sm:$0xf] %v551_v58 }
 0x1b7   :  { %556 = vst [vmem:[#allocation3 + $0x18] sm:$0xf] %v552_v59 }
 0x1bc   :  { %v561_v60 = vld [vmem:[#allocation3] sm:$0xf] }
 0x1bd   :  { %v563_v0 = vld [vmem:[#allocation3 + $0x10] sm:$0xf]  ;;  %v562_v62 = vld [vmem:[#allocation3 + $0x8] sm:$0xf]  ;;  %v557_v35 = vld [vmem:[#allocation3] sm:$0xf] }
 0x1be   :  { %597 = vrot.lane.b32.xlu0 %v563_v0, %s1712_s1  ;;  %575 = vrot.lane.b32.xlu1 %v563_v0, %s1710_s24  ;;  %v564_v61 = vld [vmem:[#allocation3 + $0x18] sm:$0xf]  ;;  %v558_v18 = vld [vmem:[#allocation3 + $0x8] sm:$0xf]  ;;  %v559_v26 = vld [vmem:[#allocation3 + $0x10] sm:$0xf] }
 0x1bf   :  { %v560_v27 = vld [vmem:[#allocation3 + $0x18] sm:$0xf] }
 0x1c2   :  { %593 = vrot.lane.b32.xlu0 %v561_v60, %s1712_s1  ;;  %571 = vrot.lane.b32.xlu1 %v561_v60, %s1710_s24 }
 0x1c6   :  { %577 = vrot.lane.b32.xlu0 %v564_v61, %s1710_s24  ;;  %619 = vrot.lane.b32.xlu1 %v563_v0, %s1713_s28 }
 0x1ca   :  { %617 = vrot.lane.b32.xlu0 %v562_v62, %s1713_s28  ;;  %573 = vrot.lane.b32.xlu1 %v562_v62, %s1710_s24  ;;  %s1721_s24 = smov 92  }
 0x1ce   :  { %621 = vrot.lane.b32.xlu0 %v564_v61, %s1713_s28  ;;  %595 = vrot.lane.b32.xlu1 %v562_v62, %s1712_s1 }
 0x1d2   :  { %623 = vrot.lane.b32.xlu0 %v565_v46, %s1713_s28  ;;  %599 = vrot.lane.b32.xlu1 %v564_v61, %s1712_s1  ;;  %s1722_s1 = smov 62  }
 0x1d6   :  { %615 = vrot.lane.b32.xlu1 %v561_v60, %s1713_s28  ;;  %699 = vrot.lane.b32.xlu0 %v685_v63, %s1719_s0  ;;  %s1723_s28 = smov 60  }
 0x1da   :  { %667 = vrot.lane.b32.xlu1 %v653_v1, %s1711_s12  ;;  %764 = vrot.lane.b32.xlu0 %v750_v2, %s1717_s18 }
 0x1de   :  { %732 = vrot.lane.b32.xlu1 %v718_v3, %s1715_s22  ;;  %829 = vrot.lane.b32.xlu0 %v815_v4, %s1720_s2 }
 0x1e2   :  { %796 = vrot.lane.b32.xlu1 %v782_v5, %s1721_s24 }
 0x1e6   :  { %862 = vrot.lane.b32.xlu1 %v848_v6, %s1722_s1 }
 0x230   :  { %v598_v9 = vpop.permute.xlu0 %597  ;;  %v576_v10 = vpop.permute.xlu1 %575 }
 0x234   :  { %v594_v11 = vpop.permute.xlu0 %593  ;;  %v572_v12 = vpop.permute.xlu1 %571 }
 0x238   :  { %v578_v13 = vpop.permute.xlu0 %577  ;;  %v620_v14 = vpop.permute.xlu1 %619 }
 0x239   :  { %v583_v22 = vsel %vm130_vm0, %v576_v10, %v578_v13  ;;  %v584_v23 = vsel %vm130_vm0, %v578_v13, %v580_v8 }
 0x23a   :  { %v591_v30 = vmax.f32 %v559_v26, %v583_v22  ;;  %v592_v31 = vmax.f32 %v560_v27, %v584_v23  ;;  %v881_v22 = vld [vmem:[#allocation4 + $0x20] sm:$0xf]  ;;  %v947_v23 = vld [vmem:[%s2215_s4] sm:$0xff] }
 0x23c   :  { %v618_v15 = vpop.permute.xlu0 %617  ;;  %v574_v16 = vpop.permute.xlu1 %573 }
 0x23d   :  { %v582_v17 = vsel %vm130_vm0, %v574_v16, %v576_v10  ;;  %v626_v28 = vsel %vm223_vm3, %v618_v15, %v620_v14  ;;  %v581_v29 = vsel %vm130_vm0, %v572_v12, %v574_v16  ;;  %vm1216_vm0 = vcmask 15368  }
 0x23e   :  { %v590_v19 = vmax.f32 %v558_v18, %v582_v17  ;;  %v589_v39 = vmax.f32 %v557_v35, %v581_v29 }
 0x240   :  { %v622_v20 = vpop.permute.xlu0 %621  ;;  %v596_v21 = vpop.permute.xlu1 %595 }
 0x241   :  { %v604_v24 = vsel %vm192_vm2, %v596_v21, %v598_v9  ;;  %v603_v36 = vsel %vm192_vm2, %v594_v11, %v596_v21  ;;  %v627_v42 = vsel %vm223_vm3, %v620_v14, %v622_v20 }
 0x242   :  { %v612_v25 = vmax.f32 %v590_v19, %v604_v24  ;;  %v611_v44 = vmax.f32 %v589_v39, %v603_v36 }
 0x244   :  { %v634_v32 = vmax.f32 %v612_v25, %v626_v28  ;;  %v624_v33 = vpop.permute.xlu0 %623  ;;  %v600_v34 = vpop.permute.xlu1 %599 }
 0x245   :  { %v605_v37 = vsel %vm192_vm2, %v598_v9, %v600_v34  ;;  %v606_v38 = vsel %vm192_vm2, %v600_v34, %v602_v7  ;;  %v628_v43 = vsel %vm223_vm3, %v622_v20, %v624_v33  ;;  %vm1729_vm2 = vmmov 0  }
 0x246   :  { %638 = vst [vmem:[#allocation4 + $0x8] sm:$0xf] %v634_v32  ;;  %v613_v40 = vmax.f32 %v591_v30, %v605_v37  ;;  %v614_v41 = vmax.f32 %v592_v31, %v606_v38 }
 0x248   :  { %v635_v45 = vmax.f32 %v613_v40, %v627_v42  ;;  %v636_v46 = vmax.f32 %v614_v41, %v628_v43  ;;  %v616_v47 = vpop.permute.xlu1 %615  ;;  %v700_v26 = vpop.permute.xlu0 %699 }
 0x249   :  { %v625_v48 = vsel %vm223_vm3, %v616_v47, %v618_v15 }
 0x24a   :  { %639 = vst [vmem:[#allocation4 + $0x10] sm:$0xf] %v635_v45  ;;  %640 = vst [vmem:[#allocation4 + $0x18] sm:$0xf] %v636_v46  ;;  %v633_v49 = vmax.f32 %v611_v44, %v625_v48 }
 0x24c   :  { %637 = vst [vmem:[#allocation4] sm:$0xf] %v633_v49  ;;  %v668_v24 = vpop.permute.xlu1 %667  ;;  %v2061_v28 = vpop.permute.xlu0 %764 }
 0x24d   :  { %v642_v50 = vld [vmem:[#allocation4 + $0x8] sm:$0xf] }
 0x24e   :  { %v650_v51 = vld [vmem:[#allocation4 + $0x8] sm:$0xf]  ;;  %646 = vst [vmem:[#allocation2 + $0x8] sm:$0xf] %v642_v50 }
 0x24f   :  { %661 = vrot.lane.b32.xlu1 %v650_v51, %s1711_s12  ;;  %v682_v59 = vld [vmem:[#allocation4 + $0x8] sm:$0xf] }
 0x250   :  { %v715_v60 = vld [vmem:[#allocation4 + $0x8] sm:$0xf]  ;;  %v733_v25 = vpop.permute.xlu1 %732  ;;  %v2065_v30 = vpop.permute.xlu0 %829 }
 0x251   :  { %v643_v52 = vld [vmem:[#allocation4 + $0x10] sm:$0xf]  ;;  %v644_v53 = vld [vmem:[#allocation4 + $0x18] sm:$0xf]  ;;  %v747_v3 = vld [vmem:[#allocation4 + $0x8] sm:$0xf] }
 0x252   :  { %v651_v54 = vld [vmem:[#allocation4 + $0x10] sm:$0xf]  ;;  %647 = vst [vmem:[#allocation2 + $0x10] sm:$0xf] %v643_v52  ;;  %648 = vst [vmem:[#allocation2 + $0x18] sm:$0xf] %v644_v53 }
 0x253   :  { %663 = vrot.lane.b32.xlu0 %v651_v54, %s1711_s12  ;;  %v641_v55 = vld [vmem:[#allocation4] sm:$0xf]  ;;  %v652_v57 = vld [vmem:[#allocation4 + $0x18] sm:$0xf]  ;;  %v683_v58 = vld [vmem:[#allocation4 + $0x10] sm:$0xf] }
 0x254   :  { %v649_v56 = vld [vmem:[#allocation4] sm:$0xf]  ;;  %645 = vst [vmem:[#allocation2] sm:$0xf] %v641_v55  ;;  %v716_v0 = vld [vmem:[#allocation4 + $0x10] sm:$0xf]  ;;  %v2059_v27 = vpop.permute.xlu1 %796 }
 0x255   :  { %659 = vrot.lane.b32.xlu1 %v649_v56, %s1711_s12  ;;  %v684_v61 = vld [vmem:[#allocation4 + $0x18] sm:$0xf]  ;;  %v681_v62 = vld [vmem:[#allocation4] sm:$0xf]  ;;  %v748_v2 = vld [vmem:[#allocation4 + $0x10] sm:$0xf] }
 0x256   :  { %v714_v63 = vld [vmem:[#allocation4] sm:$0xf]  ;;  %v717_v1 = vld [vmem:[#allocation4 + $0x18] sm:$0xf]  ;;  %v780_v4 = vld [vmem:[#allocation4 + $0x10] sm:$0xf] }
 0x257   :  { %665 = vrot.lane.b32.xlu0 %v652_v57, %s1711_s12  ;;  %v779_v5 = vld [vmem:[#allocation4 + $0x8] sm:$0xf]  ;;  %v749_v6 = vld [vmem:[#allocation4 + $0x18] sm:$0xf]  ;;  %v746_v7 = vld [vmem:[#allocation4] sm:$0xf] }
 0x258   :  { %v778_v8 = vld [vmem:[#allocation4] sm:$0xf]  ;;  %v781_v9 = vld [vmem:[#allocation4 + $0x18] sm:$0xf]  ;;  %v813_v10 = vld [vmem:[#allocation4 + $0x10] sm:$0xf]  ;;  %v2063_v29 = vpop.permute.xlu1 %862 }
 0x259   :  { %695 = vrot.lane.b32.xlu1 %v683_v58, %s1719_s0  ;;  %v812_v11 = vld [vmem:[#allocation4 + $0x8] sm:$0xf]  ;;  %v846_v12 = vld [vmem:[#allocation4 + $0x10] sm:$0xf]  ;;  %v814_v14 = vld [vmem:[#allocation4 + $0x18] sm:$0xf] }
 0x25a   :  { %v845_v13 = vld [vmem:[#allocation4 + $0x8] sm:$0xf]  ;;  %v811_v15 = vld [vmem:[#allocation4] sm:$0xf]  ;;  %v847_v17 = vld [vmem:[#allocation4 + $0x18] sm:$0xf] }
 0x25b   :  { %693 = vrot.lane.b32.xlu0 %v682_v59, %s1719_s0  ;;  %v844_v16 = vld [vmem:[#allocation4] sm:$0xf]  ;;  %v879_v18 = vld [vmem:[#allocation4 + $0x10] sm:$0xf]  ;;  %v878_v19 = vld [vmem:[#allocation4 + $0x8] sm:$0xf] }
 0x25c   :  { %v880_v20 = vld [vmem:[#allocation4 + $0x18] sm:$0xf]  ;;  %v877_v21 = vld [vmem:[#allocation4] sm:$0xf]  ;;  %v911_v46 = vld [vmem:[#allocation2] sm:$0xff] }
 0x25d   :  { %728 = vrot.lane.b32.xlu1 %v716_v0, %s1715_s22  ;;  %v912_v42 = vld [vmem:[#allocation2 + $0x8] sm:$0xff]  ;;  %v914_v50 = vld [vmem:[#allocation2 + $0x18] sm:$0xff]  ;;  %v913_v53 = vld [vmem:[#allocation2 + $0x10] sm:$0xff] }
 0x25f   :  { %726 = vrot.lane.b32.xlu0 %v715_v60, %s1715_s22 }
 0x261   :  { %697 = vrot.lane.b32.xlu1 %v684_v61, %s1719_s0 }
 0x263   :  { %691 = vrot.lane.b32.xlu0 %v681_v62, %s1719_s0 }
 0x265   :  { %724 = vrot.lane.b32.xlu1 %v714_v63, %s1715_s22 }
 0x267   :  { %730 = vrot.lane.b32.xlu0 %v717_v1, %s1715_s22 }
 0x269   :  { %760 = vrot.lane.b32.xlu1 %v748_v2, %s1717_s18 }
 0x26b   :  { %758 = vrot.lane.b32.xlu0 %v747_v3, %s1717_s18 }
 0x26d   :  { %792 = vrot.lane.b32.xlu1 %v780_v4, %s1721_s24 }
 0x26f   :  { %790 = vrot.lane.b32.xlu0 %v779_v5, %s1721_s24 }
 0x271   :  { %762 = vrot.lane.b32.xlu1 %v749_v6, %s1717_s18 }
 0x273   :  { %756 = vrot.lane.b32.xlu0 %v746_v7, %s1717_s18 }
 0x275   :  { %788 = vrot.lane.b32.xlu1 %v778_v8, %s1721_s24 }
 0x277   :  { %794 = vrot.lane.b32.xlu0 %v781_v9, %s1721_s24 }
 0x279   :  { %825 = vrot.lane.b32.xlu1 %v813_v10, %s1720_s2 }
 0x27b   :  { %823 = vrot.lane.b32.xlu0 %v812_v11, %s1720_s2 }
 0x27d   :  { %858 = vrot.lane.b32.xlu1 %v846_v12, %s1722_s1 }
 0x27f   :  { %856 = vrot.lane.b32.xlu0 %v845_v13, %s1722_s1 }
 0x281   :  { %827 = vrot.lane.b32.xlu1 %v814_v14, %s1720_s2 }
 0x283   :  { %821 = vrot.lane.b32.xlu0 %v811_v15, %s1720_s2 }
 0x285   :  { %854 = vrot.lane.b32.xlu1 %v844_v16, %s1722_s1 }
 0x287   :  { %860 = vrot.lane.b32.xlu0 %v847_v17, %s1722_s1 }
 0x289   :  { %891 = vrot.lane.b32.xlu1 %v879_v18, %s1723_s28 }
 0x28b   :  { %889 = vrot.lane.b32.xlu0 %v878_v19, %s1723_s28 }
 0x28d   :  { %893 = vrot.lane.b32.xlu1 %v880_v20, %s1723_s28 }
 0x28f   :  { %887 = vrot.lane.b32.xlu0 %v877_v21, %s1723_s28 }
 0x291   :  { %950 = vperm.xlu1 %1636, %v947_v23  }
 0x293   :  { %895 = vrot.lane.b32.xlu0 %v881_v22, %s1723_s28 }
 0x2c1   :  { %v662_v31 = vpop.permute.xlu1 %661 }
 0x2c5   :  { %v664_v32 = vpop.permute.xlu0 %663 }
 0x2c6   :  { %v670_v33 = vsel %vm161_vm1, %v662_v31, %v664_v32 }
 0x2c7   :  { %678 = vst [vmem:[#allocation2 + $0x30] sm:$0xf] %v670_v33  ;;  %v660_v34 = vpop.permute.xlu1 %659 }
 0x2c8   :  { %v669_v35 = vsel %vm161_vm1, %v660_v34, %v662_v31 }
 0x2c9   :  { %677 = vst [vmem:[#allocation2 + $0x28] sm:$0xf] %v669_v35  ;;  %v666_v36 = vpop.permute.xlu0 %665 }
 0x2ca   :  { %v671_v37 = vsel %vm161_vm1, %v664_v32, %v666_v36  ;;  %v672_v38 = vsel %vm161_vm1, %v666_v36, %v668_v24 }
 0x2cb   :  { %679 = vst [vmem:[#allocation2 + $0x38] sm:$0xf] %v671_v37  ;;  %680 = vst [vmem:[#allocation2 + $0x40] sm:$0xf] %v672_v38  ;;  %v696_v39 = vpop.permute.xlu1 %695 }
 0x2cd   :  { %v694_v40 = vpop.permute.xlu0 %693 }
 0x2ce   :  { %v703_v41 = vsel %vm701_vm9, %v694_v40, %v696_v39  ;;  %v916_v43 = vld [vmem:[#allocation2 + $0x30] sm:$0xff] }
 0x2cf   :  { %711 = vst [vmem:[#allocation2 + $0x58] sm:$0xf] %v703_v41  ;;  %v729_v44 = vpop.permute.xlu1 %728  ;;  %v1566_v45 = vpack.c.bf16 %v916_v43, %v912_v42 }
 0x2d0   :  { %v915_v47 = vld [vmem:[#allocation2 + $0x28] sm:$0xff] }
 0x2d1   :  { %v727_v48 = vpop.permute.xlu0 %726  ;;  %1567 = vmatprep.subr.bf16.mxu0 %v1566_v45  ;;  %v1568_v49 = vpack.c.bf16 %v915_v47, %v911_v46 }
 0x2d2   :  { %v735_v51 = vsel %vm285_vm5, %v727_v48, %v729_v44  ;;  %v918_v52 = vld [vmem:[#allocation2 + $0x40] sm:$0xff]  ;;  %v917_v54 = vld [vmem:[#allocation2 + $0x38] sm:$0xff] }
 0x2d3   :  { %743 = vst [vmem:[#allocation2 + $0x80] sm:$0xf] %v735_v51  ;;  %v698_v55 = vpop.permute.xlu1 %697  ;;  %1569 = vmatpush1.bf16.msra.mxu0 %v1568_v49  ;;  %v1582_v56 = vpack.c.bf16 %v918_v52, %v914_v50  ;;  %v1584_v57 = vpack.c.bf16 %v917_v54, %v913_v53 }
 0x2d4   :  { %v704_v58 = vsel %vm701_vm9, %v696_v39, %v698_v55  ;;  %v705_v59 = vsel %vm701_vm9, %v698_v55, %v700_v26 }
 0x2d5   :  { %712 = vst [vmem:[#allocation2 + $0x60] sm:$0xf] %v704_v58  ;;  %713 = vst [vmem:[#allocation2 + $0x68] sm:$0xf] %v705_v59  ;;  %1583 = vmatprep.subr.bf16.mxu1 %v1582_v56  ;;  %v692_v0 = vpop.permute.xlu0 %691 }
 0x2d6   :  { %v702_v60 = vsel %vm701_vm9, %v692_v0, %v694_v40  ;;  %1585 = vmatpush1.bf16.msra.mxu1 %v1584_v57  ;;  %v920_v3 = vld [vmem:[#allocation2 + $0x58] sm:$0xff] }
 0x2d7   :  { %710 = vst [vmem:[#allocation2 + $0x50] sm:$0xf] %v702_v60  ;;  %v725_v61 = vpop.permute.xlu1 %724 }
 0x2d8   :  { %v734_v62 = vsel %vm285_vm5, %v725_v61, %v727_v48 }
 0x2d9   :  { %742 = vst [vmem:[#allocation2 + $0x78] sm:$0xf] %v734_v62  ;;  %v731_v63 = vpop.permute.xlu0 %730 }
 0x2da   :  { %v736_v1 = vsel %vm285_vm5, %v729_v44, %v731_v63  ;;  %v737_v2 = vsel %vm285_vm5, %v731_v63, %v733_v25  ;;  %v924_v4 = vld [vmem:[#allocation2 + $0x80] sm:$0xff] }
 0x2db   :  { %744 = vst [vmem:[#allocation2 + $0x88] sm:$0xf] %v736_v1  ;;  %745 = vst [vmem:[#allocation2 + $0x90] sm:$0xf] %v737_v2  ;;  %v761_v5 = vpop.permute.xlu1 %760  ;;  %v1570_v6 = vpack.c.bf16 %v924_v4, %v920_v3 }
 0x2dc   :  { %v922_v14 = vld [vmem:[#allocation2 + $0x68] sm:$0xff]  ;;  %v921_v17 = vld [vmem:[#allocation2 + $0x60] sm:$0xff] }
 0x2dd   :  { %v759_v7 = vpop.permute.xlu0 %758  ;;  %1571 = vmatprep.subr.bf16.mxu0 %v1570_v6 }
 0x2de   :  { %v767_v8 = vsel %vm347_vm7, %v759_v7, %v761_v5  ;;  %v919_v10 = vld [vmem:[#allocation2 + $0x50] sm:$0xff] }
 0x2df   :  { %775 = vst [vmem:[#allocation2 + $0xa8] sm:$0xf] %v767_v8  ;;  %v793_v9 = vpop.permute.xlu1 %792 }
 0x2e0   :  { %v923_v11 = vld [vmem:[#allocation2 + $0x78] sm:$0xff] }
 0x2e1   :  { %v791_v12 = vpop.permute.xlu0 %790  ;;  %v1572_v13 = vpack.c.bf16 %v923_v11, %v919_v10 }
 0x2e2   :  { %v800_v15 = vsel %vm798_vm10, %v791_v12, %v793_v9  ;;  %v926_v16 = vld [vmem:[#allocation2 + $0x90] sm:$0xff]  ;;  %v925_v18 = vld [vmem:[#allocation2 + $0x88] sm:$0xff] }
 0x2e3   :  { %808 = vst [vmem:[#allocation2 + $0xd0] sm:$0xf] %v800_v15  ;;  %v763_v19 = vpop.permute.xlu1 %762  ;;  %1573 = vmatpush1.bf16.msra.mxu0 %v1572_v13  ;;  %v1586_v20 = vpack.c.bf16 %v926_v16, %v922_v14  ;;  %v1588_v21 = vpack.c.bf16 %v925_v18, %v921_v17  ;;  %v910_v17 = vld [vmem:[%s2214_s3] sm:$0xff]  ;;  %s1724_s3 = smov 1  }
 0x2e4   :  { %v768_v22 = vsel %vm347_vm7, %v761_v5, %v763_v19  ;;  %v769_v23 = vsel %vm347_vm7, %v763_v19, %v2061_v28 }
 0x2e5   :  { %776 = vst [vmem:[#allocation2 + $0xb0] sm:$0xf] %v768_v22  ;;  %777 = vst [vmem:[#allocation2 + $0xb8] sm:$0xf] %v769_v23  ;;  %v757_v24 = vpop.permute.xlu0 %756  ;;  %1587 = vmatprep.subr.bf16.mxu1 %v1586_v20 }
 0x2e6   :  { %v766_v25 = vsel %vm347_vm7, %v757_v24, %v759_v7  ;;  %1589 = vmatpush1.bf16.msra.mxu1 %v1588_v21  ;;  %v928_v35 = vld [vmem:[#allocation2 + $0xa8] sm:$0xff] }
 0x2e7   :  { %774 = vst [vmem:[#allocation2 + $0xa0] sm:$0xf] %v766_v25  ;;  %v789_v26 = vpop.permute.xlu1 %788 }
 0x2e8   :  { %v799_v31 = vsel %vm798_vm10, %v789_v26, %v791_v12 }
 0x2e9   :  { %807 = vst [vmem:[#allocation2 + $0xc8] sm:$0xf] %v799_v31  ;;  %v795_v32 = vpop.permute.xlu0 %794 }
 0x2ea   :  { %v801_v33 = vsel %vm798_vm10, %v793_v9, %v795_v32  ;;  %v802_v34 = vsel %vm798_vm10, %v795_v32, %v2059_v27  ;;  %v932_v28 = vld [vmem:[#allocation2 + $0xd0] sm:$0xff] }
 0x2eb   :  { %809 = vst [vmem:[#allocation2 + $0xd8] sm:$0xf] %v801_v33  ;;  %810 = vst [vmem:[#allocation2 + $0xe0] sm:$0xf] %v802_v34  ;;  %v826_v36 = vpop.permute.xlu1 %825  ;;  %v1574_v37 = vpack.c.bf16 %v932_v28, %v928_v35 }
 0x2ec   :  { %v930_v45 = vld [vmem:[#allocation2 + $0xb8] sm:$0xff]  ;;  %v929_v47 = vld [vmem:[#allocation2 + $0xb0] sm:$0xff] }
 0x2ed   :  { %v824_v38 = vpop.permute.xlu0 %823  ;;  %1575 = vmatprep.subr.bf16.mxu0 %v1574_v37 }
 0x2ee   :  { %v833_v39 = vsel %vm831_vm11, %v824_v38, %v826_v36  ;;  %v927_v41 = vld [vmem:[#allocation2 + $0xa0] sm:$0xff] }
 0x2ef   :  { %841 = vst [vmem:[#allocation2 + $0xf8] sm:$0xf] %v833_v39  ;;  %v859_v40 = vpop.permute.xlu1 %858 }
 0x2f0   :  { %v931_v42 = vld [vmem:[#allocation2 + $0xc8] sm:$0xff] }
 0x2f1   :  { %v857_v43 = vpop.permute.xlu0 %856  ;;  %v1576_v44 = vpack.c.bf16 %v931_v42, %v927_v41 }
 0x2f2   :  { %v866_v27 = vsel %vm864_vm12, %v857_v43, %v859_v40  ;;  %v934_v46 = vld [vmem:[#allocation2 + $0xe0] sm:$0xff]  ;;  %v933_v48 = vld [vmem:[#allocation2 + $0xd8] sm:$0xff] }
 0x2f3   :  { %874 = vst [vmem:[#allocation2 + $0x120] sm:$0xf] %v866_v27  ;;  %v828_v49 = vpop.permute.xlu1 %827  ;;  %1577 = vmatpush1.bf16.msra.mxu0 %v1576_v44  ;;  %v1590_v50 = vpack.c.bf16 %v934_v46, %v930_v45  ;;  %v1592_v51 = vpack.c.bf16 %v933_v48, %v929_v47 }
 0x2f4   :  { %v834_v52 = vsel %vm831_vm11, %v826_v36, %v828_v49  ;;  %v835_v53 = vsel %vm831_vm11, %v828_v49, %v2065_v30 }
 0x2f5   :  { %842 = vst [vmem:[#allocation2 + $0x100] sm:$0xf] %v834_v52  ;;  %843 = vst [vmem:[#allocation2 + $0x108] sm:$0xf] %v835_v53  ;;  %v822_v54 = vpop.permute.xlu0 %821  ;;  %1591 = vmatprep.subr.bf16.mxu1 %v1590_v50 }
 0x2f6   :  { %v832_v55 = vsel %vm831_vm11, %v822_v54, %v824_v38  ;;  %1593 = vmatpush1.bf16.msra.mxu1 %v1592_v51  ;;  %v936_v60 = vld [vmem:[#allocation2 + $0xf8] sm:$0xff] }
 0x2f7   :  { %840 = vst [vmem:[#allocation2 + $0xf0] sm:$0xf] %v832_v55  ;;  %v855_v56 = vpop.permute.xlu1 %854 }
 0x2f8   :  { %v865_v57 = vsel %vm864_vm12, %v855_v56, %v857_v43 }
 0x2f9   :  { %873 = vst [vmem:[#allocation2 + $0x118] sm:$0xf] %v865_v57  ;;  %v861_v58 = vpop.permute.xlu0 %860 }
 0x2fa   :  { %v867_v59 = vsel %vm864_vm12, %v859_v40, %v861_v58  ;;  %v868_v0 = vsel %vm864_vm12, %v861_v58, %v2063_v29  ;;  %v940_v30 = vld [vmem:[#allocation2 + $0x120] sm:$0xff] }
 0x2fb   :  { %875 = vst [vmem:[#allocation2 + $0x128] sm:$0xf] %v867_v59  ;;  %876 = vst [vmem:[#allocation2 + $0x130] sm:$0xf] %v868_v0  ;;  %v892_v61 = vpop.permute.xlu1 %891  ;;  %v1578_v62 = vpack.c.bf16 %v940_v30, %v936_v60 }
 0x2fc   :  { %v938_v7 = vld [vmem:[#allocation2 + $0x108] sm:$0xff]  ;;  %v937_v10 = vld [vmem:[#allocation2 + $0x100] sm:$0xff] }
 0x2fd   :  { %v890_v63 = vpop.permute.xlu0 %889  ;;  %1579 = vmatprep.subr.bf16.mxu0 %v1578_v62 }
 0x2fe   :  { %v899_v1 = vsel %vm897_vm13, %v890_v63, %v892_v61  ;;  %v935_v4 = vld [vmem:[#allocation2 + $0xf0] sm:$0xff] }
 0x2ff   :  { %907 = vst [vmem:[#allocation2 + $0x148] sm:$0xf] %v899_v1  ;;  %v894_v2 = vpop.permute.xlu1 %893  ;;  %v1236_v1 = vld [vmem:[%s2216_s5] sm:$0xff] }
 0x300   :  { %v900_v3 = vsel %vm897_vm13, %v892_v61, %v894_v2  ;;  %v939_v5 = vld [vmem:[#allocation2 + $0x118] sm:$0xff] }
 0x301   :  { %908 = vst [vmem:[#allocation2 + $0x150] sm:$0xf] %v900_v3  ;;  %v888_v6 = vpop.permute.xlu0 %887  ;;  %v1580_v29 = vpack.c.bf16 %v939_v5, %v935_v4  ;;  %v1245_v3 = vld [vmem:[%s2217_s6 + $0x8] sm:$0xff]  ;;  %v1246_v4 = vld [vmem:[%s2217_s6 + $0x10] sm:$0xff]  ;;  %v1247_v5 = vld [vmem:[%s2217_s6 + $0x18] sm:$0xff] }
 0x302   :  { %v898_v8 = vsel %vm897_vm13, %v888_v6, %v890_v63  ;;  %v942_v9 = vld [vmem:[#allocation2 + $0x130] sm:$0xff]  ;;  %v941_v11 = vld [vmem:[#allocation2 + $0x128] sm:$0xff]  ;;  %v1371_v6 = vld [vmem:[%s2219_s8] sm:$0x3] }
 0x303   :  { %906 = vst [vmem:[#allocation2 + $0x140] sm:$0xf] %v898_v8  ;;  %1581 = vmatpush1.bf16.msra.mxu0 %v1580_v29  ;;  %v1594_v12 = vpack.c.bf16 %v942_v9, %v938_v7  ;;  %v1596_v13 = vpack.c.bf16 %v941_v11, %v937_v10  ;;  %v1659_v29 = vld [vmem:[#allocation2 + $0x20] sm:$0xff] }
 0x305   :  { %v896_v14 = vpop.permute.xlu0 %895  ;;  %1595 = vmatprep.subr.bf16.mxu1 %v1594_v12 }
 0x306   :  { %v901_v15 = vsel %vm897_vm13, %v894_v2, %v896_v14  ;;  %1597 = vmatpush1.bf16.msra.mxu1 %v1596_v13  ;;  %v944_v16 = vld [vmem:[#allocation2 + $0x148] sm:$0xff]  ;;  %v1244_v2 = vld [vmem:[%s2217_s6] sm:$0xff] }
 0x307   :  { %909 = vst [vmem:[#allocation2 + $0x158] sm:$0xf] %v901_v15  ;;  %972 = vmatprep.subr.mxu0 %v944_v16 }
 0x308   :  { %v945_v20 = vld [vmem:[#allocation2 + $0x150] sm:$0xff] }
 0x30a   :  { %v943_v18 = vld [vmem:[#allocation2 + $0x140] sm:$0xff] }
 0x30b   :  { %973 = vmatpush1.msra.mxu0 %v943_v18 }
 0x30c   :  { %1489 = vmatmul.mubr.msk.f32.vlgmr.msra.gmra.mrb[2].mxu0 %vm403_vm8, %v910_v17 }
 0x30d   :  { %1517 = vmatprep.mubr.msk.f32.mxu0 %vm1268_vm15, %v1236_v1 }
 0x30e   :  { %v946_v19 = vld [vmem:[#allocation2 + $0x158] sm:$0xff] }
 0x30f   :  { %1043 = vmatprep.subr.mxu1 %v946_v19 }
 0x310   :  { %1044 = vmatpush1.msra.mxu1 %v945_v20  ;;  %v951_v21 = vpop.permute.xlu1 %950  ;;  %v1237_v20 = vld [vmem:[%s2216_s5 + $0x8] sm:$0xff] }
 0x311   :  { %1490 = vmatmul.mubr.msk.f32.vlgmr.msra.gmra.mrb[2].mxu1 %vm403_vm8, %v910_v17 }
 0x312   :  { %1531 = vmatprep.mubr.msk.f32.mxu1 %vm1729_vm2, %v1659_v29 }
 0x3df   :  { %v1022_v22 = vpop.f32.mrb[2].mxu0 }
 0x3e0   :  { %v1023_v23 = vadd.f32 %v1022_v22, %v951_v21  ;;  %v1024_v24 = vpop.f32.mrb[3].mxu0  ;;  %v1239_v22 = vld [vmem:[%s2216_s5 + $0x18] sm:$0xff] }
 0x3e1   :  { %v1025_v25 = vadd.f32 %v1024_v24, %v951_v21 }
 0x3e2   :  { %v1098_v26 = vmax.f32 %v1023_v23, 0.0 }
 0x3e3   :  { %v1099_v31 = vmax.f32 %v1025_v25, 0.0 }
 0x3e4   :  { %1102 = vst [vmem:[#allocation3] sm:$0xff] %v1098_v26  ;;  %v1093_v32 = vpop.f32.mrb[2].mxu1  ;;  %1120 = vrot.lane.b32.xlu0 %v1098_v26, %s1711_s12 }
 0x3e5   :  { %1103 = vst [vmem:[#allocation3 + $0x8] sm:$0xff] %v1099_v31  ;;  %v1094_v33 = vadd.f32 %v1093_v32, %v951_v21  ;;  %v1095_v34 = vpop.f32.mrb[3].mxu1  ;;  %1122 = vrot.lane.b32.xlu1 %v1099_v31, %s1711_s12 }
 0x3e6   :  { %v1096_v35 = vadd.f32 %v1095_v34, %v951_v21  ;;  %v1238_v21 = vld [vmem:[%s2216_s5 + $0x10] sm:$0xff] }
 0x3e7   :  { %v1100_v28 = vmax.f32 %v1094_v33, 0.0 }
 0x3e8   :  { %v2110_v36 = vmax.f32 %v1096_v35, 0.0 }
 0x3e9   :  { %1104 = vst [vmem:[#allocation3 + $0x10] sm:$0xff] %v1100_v28  ;;  %1124 = vrot.lane.b32.xlu0 %v1100_v28, %s1711_s12 }
 0x3ea   :  { %1105 = vst [vmem:[#allocation3 + $0x18] sm:$0xff] %v2110_v36  ;;  %1126 = vrot.lane.b32.xlu1 %v2110_v36, %s1711_s12 }
 0x3ed   :  { %1142 = vrot.lane.b32.xlu0 %v1098_v26, %s1715_s22 }
 0x3ee   :  { %1144 = vrot.lane.b32.xlu1 %v1099_v31, %s1715_s22 }
 0x3f1   :  { %1146 = vrot.lane.b32.xlu0 %v1100_v28, %s1715_s22 }
 0x3f2   :  { %1148 = vrot.lane.b32.xlu1 %v2110_v36, %s1715_s22 }
 0x3f5   :  { %1164 = vrot.lane.b32.xlu0 %v1098_v26, %s1717_s18 }
 0x3f6   :  { %1166 = vrot.lane.b32.xlu1 %v1099_v31, %s1717_s18 }
 0x3f9   :  { %1168 = vrot.lane.b32.xlu0 %v1100_v28, %s1717_s18 }
 0x3fa   :  { %1170 = vrot.lane.b32.xlu1 %v2110_v36, %s1717_s18 }
 0x456   :  { %v1121_v37 = vpop.permute.xlu0 %1120 }
 0x457   :  { %v1123_v38 = vpop.permute.xlu1 %1122 }
 0x458   :  { %v1130_v43 = vsel %vm161_vm1, %v1121_v37, %v1123_v38 }
 0x459   :  { %v1138_v46 = vmax.f32 %v1098_v26, %v1130_v43 }
 0x45b   :  { %v1125_v39 = vpop.permute.xlu0 %1124 }
 0x45c   :  { %v2126_v40 = vpop.permute.xlu1 %1126  ;;  %v1131_v47 = vsel %vm161_vm1, %v1123_v38, %v1125_v39 }
 0x45d   :  { %v1132_v48 = vsel %vm161_vm1, %v1125_v39, %v2126_v40  ;;  %v1139_v53 = vmax.f32 %v1099_v31, %v1131_v47 }
 0x45e   :  { %v1140_v56 = vmax.f32 %v1100_v28, %v1132_v48 }
 0x45f   :  { %v1143_v41 = vpop.permute.xlu0 %1142 }
 0x460   :  { %v1145_v42 = vpop.permute.xlu1 %1144 }
 0x461   :  { %v1152_v27 = vsel %vm285_vm5, %v1143_v41, %v1145_v42 }
 0x462   :  { %v1160_v50 = vmax.f32 %v1138_v46, %v1152_v27 }
 0x463   :  { %v1147_v44 = vpop.permute.xlu0 %1146 }
 0x464   :  { %v2129_v45 = vpop.permute.xlu1 %1148  ;;  %v1153_v51 = vsel %vm285_vm5, %v1145_v42, %v1147_v44  ;;  %v1728_v42 = vmov 0.0|0.0  }
 0x465   :  { %v1154_v54 = vsel %vm285_vm5, %v1147_v44, %v2129_v45  ;;  %v1161_v58 = vmax.f32 %v1139_v53, %v1153_v51  ;;  %1606 = vmatprep.subr.bf16.mxu1 %v1728_v42 }
 0x466   :  { %v1162_v0 = vmax.f32 %v1140_v56, %v1154_v54  ;;  %v1370_v54 = vld [vmem:[%s2218_s7] sm:$0x3]  ;;  %s1730_s7 = smov [#allocation9]  }
 0x467   :  { %v1165_v49 = vpop.permute.xlu0 %1164 }
 0x468   :  { %v1167_v52 = vpop.permute.xlu1 %1166 }
 0x469   :  { %v1174_v55 = vsel %vm347_vm7, %v1165_v49, %v1167_v52 }
 0x46a   :  { %v1182_v57 = vmax.f32 %v1160_v50, %v1174_v55 }
 0x46b   :  { %v1169_v59 = vpop.permute.xlu0 %1168 }
 0x46c   :  { %1186 = vst [vmem:[#allocation4] sm:$0xff] %v1182_v57  ;;  %v1175_v60 = vsel %vm347_vm7, %v1167_v52, %v1169_v59  ;;  %v2140_v30 = vpop.permute.xlu1 %1170  ;;  %1195 = vrot.lane.b32.xlu0 %v1182_v57, %s1719_s0  ;;  %1192 = vst.msk [vmem:[#allocation5] sm:$0xff] %vm1191_vm14, %v1182_v57 }
 0x46d   :  { %v1183_v61 = vmax.f32 %v1161_v58, %v1175_v60  ;;  %v1176_v62 = vsel %vm347_vm7, %v1169_v59, %v2140_v30 }
 0x46e   :  { %v1184_v63 = vmax.f32 %v1162_v0, %v1176_v62 }
 0x46f   :  { %1187 = vst [vmem:[#allocation4 + $0x8] sm:$0xff] %v1183_v61 }
 0x470   :  { %1188 = vst [vmem:[#allocation4 + $0x10] sm:$0xff] %v1184_v63  ;;  %1213 = vrot.lane.b32.xlu1 %v1184_v63, %s1724_s3  ;;  %1220 = vrot.lane.b32.xlu0 %v1184_v63, %s1725_s29 }
 0x474   :  { %1201 = vrot.lane.b32.xlu1 %v1182_v57, %s1720_s2  ;;  %1207 = vrot.lane.b32.xlu0 %v1182_v57, %s1723_s28  ;;  %s1478_s28 = sshll.u32 %s1730_s7, 4  ;;  %s1479_s28 = int_to_ptr.vmem [resolvable:$true] %s1478_s28 }
 0x475   :  { %s1682_s25 = scalar_lea.vmem %s1479_s28, 32  ;;  %p1687_p9 = scmp.lt.s32.totalorder %s1479_s28, %s1479_s28 }
 0x476   :  { %p1683_p8 = scmp.ne.s32.totalorder %s1479_s28, %s1682_s25  ;;  %p1688_p10 = scmp.lt.s32.totalorder %s1682_s25, %s1682_s25 }
 0x478   :  { %1226 = vrot.lane.b32.xlu1 %v1184_v63, %s1726_s11  ;;  %1232 = vrot.lane.b32.xlu0 %v1184_v63, %s1727_s13  ;;  %p1689_p11 = por %p1688_p10, %p1687_p9 }
 0x47a   :  { %p1690_p12 = pnand %p1689_p11, %p1683_p8 }
 0x47c   :  { %1250 = vperm.xlu1 %1636, %v1244_v2   ;;  %1255 = vperm.xlu0 %1635, %v1245_v3  }
 0x480   :  { %1260 = vperm.xlu1 %1636, %v1246_v4   ;;  %1265 = vperm.xlu0 %1635, %v1247_v5  }
 0x484   :  { %1374 = vperm.xlu1 %1636, %v1371_v6   ;;  %1128 = vrot.lane.b32.xlu0 %v1659_v29, %s1711_s12 }
 0x488   :  { %1150 = vrot.lane.b32.xlu1 %v1659_v29, %s1715_s22  ;;  %1172 = vrot.lane.b32.xlu0 %v1659_v29, %s1717_s18 }
 0x4de   :  { %v1196_v7 = vpop.permute.xlu0 %1195 }
 0x4df   :  { %1198 = vst.msk [vmem:[#allocation5 + $0x8] sm:$0xff] %vm1191_vm14, %v1196_v7 }
 0x4e2   :  { %v1214_v8 = vpop.permute.xlu1 %1213  ;;  %v1221_v9 = vpop.permute.xlu0 %1220 }
 0x4e3   :  { %1217 = vst.msk [vmem:[#allocation5] sm:$0xff] %vm1216_vm0, %v1214_v8  ;;  %1223 = vst.msk [vmem:[#allocation5 + $0x8] sm:$0xff] %vm1216_vm0, %v1221_v9 }
 0x4e6   :  { %v1202_v10 = vpop.permute.xlu1 %1201  ;;  %v1208_v11 = vpop.permute.xlu0 %1207 }
 0x4e7   :  { %1204 = vst.msk [vmem:[#allocation5 + $0x10] sm:$0xff] %vm1191_vm14, %v1202_v10  ;;  %1210 = vst.msk [vmem:[#allocation5 + $0x18] sm:$0xff] %vm1191_vm14, %v1208_v11 }
 0x4ea   :  { %v1227_v12 = vpop.permute.xlu1 %1226  ;;  %v1233_v13 = vpop.permute.xlu0 %1232  ;;  %v1240_v14 = vld [vmem:[#allocation5] sm:$0xff]  ;;  %v1241_v15 = vld [vmem:[#allocation5 + $0x8] sm:$0xff] }
 0x4eb   :  { %1229 = vst.msk [vmem:[#allocation5 + $0x10] sm:$0xff] %vm1216_vm0, %v1227_v12  ;;  %1235 = vst.msk [vmem:[#allocation5 + $0x18] sm:$0xff] %vm1216_vm0, %v1233_v13  ;;  %v1598_v16 = vpack.c.bf16 %v1241_v15, %v1240_v14 }
 0x4ed   :  { %1599 = vmatprep.subr.bf16.mxu0 %v1598_v16 }
 0x4ee   :  { %1601 = vmatpush3.bf16.msra.mxu0 %v1598_v16 }
 0x4f2   :  { %v1242_v17 = vld [vmem:[#allocation5 + $0x10] sm:$0xff]  ;;  %v1243_v18 = vld [vmem:[#allocation5 + $0x18] sm:$0xff] }
 0x4f3   :  { %v1602_v19 = vpack.c.bf16 %v1243_v18, %v1242_v17 }
 0x4f5   :  { %1603 = vmatprep.subr.bf16.mxu0 %v1602_v19 }
 0x4f6   :  { %1605 = vmatpush3.bf16.msra.mxu0 %v1602_v19 }
 0x4f9   :  { %1518 = vmatmul.mubr.msk.f32.vlgmr.msra.gmra.mrb[4].mxu0 %vm1268_vm15, %v1237_v20 }
 0x4fa   :  { %1520 = vmatprep.mubr.msk.f32.mxu0 %vm1268_vm15, %v1238_v21 }
 0x4fb   :  { %v1251_v23 = vpop.permute.xlu1 %1250  ;;  %v1256_v24 = vpop.permute.xlu0 %1255 }
 0x4fd   :  { %1521 = vmatmul.mubr.msk.f32.gmra.mrb[6].mxu0 %vm1268_vm15, %v1239_v22 }
 0x4ff   :  { %v1261_v25 = vpop.permute.xlu1 %1260  ;;  %v1266_v26 = vpop.permute.xlu0 %1265 }
 0x503   :  { %v1375_v31 = vpop.permute.xlu1 %1374  ;;  %v1129_v32 = vpop.permute.xlu0 %1128 }
 0x504   :  { %v1133_v33 = vsel %vm161_vm1, %v2126_v40, %v1129_v32  ;;  %vm1450_vm1 = vcmask 9216  }
 0x505   :  { %v1141_v34 = vmax.f32 %v2110_v36, %v1133_v33 }
 0x507   :  { %v1151_v35 = vpop.permute.xlu1 %1150  ;;  %v1173_v28 = vpop.permute.xlu0 %1172 }
 0x508   :  { %v1155_v37 = vsel %vm285_vm5, %v2129_v45, %v1151_v35  ;;  %v1177_v39 = vsel %vm347_vm7, %v2140_v30, %v1173_v28 }
 0x509   :  { %v1163_v38 = vmax.f32 %v1141_v34, %v1155_v37 }
 0x50b   :  { %v1185_v41 = vmax.f32 %v1163_v38, %v1177_v39 }
 0x50d   :  { %1189 = vst [vmem:[#allocation4 + $0x18] sm:$0xff] %v1185_v41 }
 0x5cc   :  { %v1519_v43 = vpop.f32.mrb[4].mxu0 }
 0x5cd   :  { %v1353_v44 = vadd.f32 %v1519_v43, %v1256_v24  ;;  %v1347_v40 = vpop.f32.mrb[5].mxu0 }
 0x5ce   :  { %v1348_v27 = vadd.f32 %v1347_v40, %v1251_v23 }
 0x5cf   :  { %v1367_v36 = vmax.f32 %v1353_v44, 0.0 }
 0x5d0   :  { %v1366_v46 = vmax.f32 %v1348_v27, 0.0  ;;  %v1522_v47 = vpop.f32.mrb[6].mxu0 }
 0x5d1   :  { %v1363_v48 = vadd.f32 %v1522_v47, %v1266_v26  ;;  %v1357_v49 = vpop.f32.mrb[7].mxu0 }
 0x5d2   :  { %v1607_v45 = vpack.c.bf16 %v1367_v36, %v1366_v46  ;;  %v1358_v50 = vadd.f32 %v1357_v49, %v1261_v25 }
 0x5d3   :  { %v1369_v51 = vmax.f32 %v1363_v48, 0.0 }
 0x5d4   :  { %v1368_v52 = vmax.f32 %v1358_v50, 0.0  ;;  %1608 = vmatpush3.bf16.msra.mxu1 %v1607_v45 }
 0x5d5   :  { %1609 = vmatprep.subr.bf16.mxu1 %v1728_v42 }
 0x5d6   :  { %v1610_v53 = vpack.c.bf16 %v1369_v51, %v1368_v52 }
 0x5d8   :  { %1611 = vmatpush3.bf16.msra.mxu1 %v1610_v53 }
 0x5db   :  { %1532 = vmatmul.mubr.msk.f32.vlgmr.msra.gmra.mrb[4].mxu1 %vm1268_vm15, %v1370_v54 }
 0x6ae   :  { %v1446_v55 = vpop.f32.mrb[4].mxu1 }
 0x6af   :  { %v1447_v56 = vadd.f32 %v1446_v55, %v1375_v31  ;;  %v1533_v57 = vpop.f32.mrb[5].mxu1 }
 0x6b1   :  { %v1451_v58 = vsel %vm1450_vm1, %v1447_v56, -inf }
 0x6b2   :  { %v1452_v59 = vrot.slane %v1451_v58, 4 }
 0x6b4   :  { %v1453_v0 = vmax.f32 %v1451_v58, %v1452_v59 }
 0x6b6   :  { %v1454_v60 = vrot.slane %v1453_v0, 2 }
 0x6b8   :  { %v1455_v30 = vmax.f32 %v1453_v0, %v1454_v60 }
 0x6ba   :  { %v1456_v61 = vrot.slane %v1455_v30, 1 }
 0x6bc   :  { %v1457_v62 = vmax.f32 %v1455_v30, %v1456_v61 }
 0x6be   :  { %v1458_v63 = vsub.f32 %v1447_v56, %v1457_v62 }
 0x6c0   :  { %v1459_v1 = vmul.f32 1.442695, %v1458_v63 }
 0x6c2   :  { %1655 = vpow2.f32 %v1459_v1 }
 0x6cc   :  { %v1656_v2 = vpop.eup %1655 }
 0x6cd   :  { %v1461_v3 = vsel %vm1450_vm1, %v1656_v2, 0.0 }
 0x6ce   :  { %v1462_v4 = vrot.slane %v1461_v3, 4 }
 0x6d0   :  { %v1463_v5 = vadd.f32 %v1462_v4, %v1461_v3 }
 0x6d2   :  { %v1464_v6 = vrot.slane %v1463_v5, 2 }
 0x6d4   :  { %v1465_v29 = vadd.f32 %v1464_v6, %v1463_v5 }
 0x6d6   :  { %v1466_v7 = vrot.slane %v1465_v29, 1 }
 0x6d8   :  { %v1467_v8 = vadd.f32 %v1466_v7, %v1465_v29 }
 0x6da   :  { %1657 = vlog2.f32 %v1467_v8 }
 0x6e4   :  { %v1658_v9 = vpop.eup %1657 }
 0x6e5   :  { %v1469_v10 = vmul.f32 0.6931472, %v1658_v9 }
 0x6e7   :  { %v1470_v11 = vsub.f32 %v1458_v63, %v1469_v10 }
 0x6e9   :  { %1471 = vst.msk [vmem:[#allocation9] sm:$0x3] %vm1450_vm1, %v1470_v11 }
 0x6ea   :  { %1693 = shalt.err (!%p1690_p12)
}
 0x6eb   :  { %s1694_s27 = scalar_lea.hbm %s2220_s9, 32 }
 0x6ec   :  { %p1695_p13 = scmp.ne.s32.totalorder %s2220_s9, %s1694_s27  ;;  %p1698_p0 = scmp.lt.u32.totalorder %s1694_s27, %s2220_s9 }
 0x6ee   :  { %p1700_p1 = pnand %p1698_p0, %p1695_p13 }
 0x6f0   :  { %1703 = shalt.err (!%p1700_p1)
}
 0x6f1   :  { %1481 = dma.vmem_to_hbm [thread:$0]  %s1479_s28, 32, %s2220_s9, [#allocation8]  }
 0x6f2   :  { %1706 = dma.done.wait [#allocation8], 32  }
 0x6f3   :  { %1707 = vsyncadd [#allocation8], 4294967264 }
 0x6f4   :  { %1485 = vsyncpa [#allocation7], 1 }
 0x6f5   :  { %1486 = vsyncpa [#allocation8], 1 }

</bundles_post_ra>
